<compile_context>
chip_gen: v7x
topology: tpu7x:2x2x1
jax: 0.10.0
libtpu: 0.0.40
codegen_flags: <defaults>
</compile_context>

<pallas_src>
import functools
import math

import jax
import jax.numpy as jnp
from jax.experimental import pallas as pl
from jax.experimental.pallas import tpu as pltpu


# ----------------------------- in-kernel helpers -----------------------------

def _erf(x):
    # Abramowitz & Stegun 7.1.26 rational approximation (|err| < 1.5e-7).
    a1, a2, a3, a4, a5 = 0.254829592, -0.284496736, 1.421413741, -1.453152027, 1.061405429
    p = 0.3275911
    s = jnp.where(x >= 0.0, 1.0, -1.0)
    z = jnp.abs(x)
    t = 1.0 / (1.0 + p * z)
    poly = ((((a5 * t + a4) * t + a3) * t + a2) * t + a1) * t
    return s * (1.0 - poly * jnp.exp(-z * z))


def _gelu_exact(x):
    # nn.GELU() default = exact erf formulation.
    return 0.5 * x * (1.0 + _erf(x * (1.0 / math.sqrt(2.0))))


def _layernorm(x, w, b, eps=1e-5):
    mu = jnp.mean(x, axis=-1, keepdims=True)
    xc = x - mu
    var = jnp.mean(xc * xc, axis=-1, keepdims=True)
    return xc * jax.lax.rsqrt(var + eps) * w + b


# --------------------------------- kernel ------------------------------------

def transformer_block_kernel(
    xq_ref,                      # (1, TQ, D) f32   -- query tile of x
    xkv_ref,                     # (1, S,  D) f32   -- full sequence (for K/V)
    wq_ref, bq_ref,              # (D, D)  bf16 ; (1, D)  f32  (1/sqrt(hd) folded in)
    wkv_ref, bkv_ref,            # (D, 2D) bf16 ; (1, 2D) f32
    wo_ref, bo_ref,              # (D, D)  bf16 ; (1, D)  f32
    ln1w_ref, ln1b_ref,          # (1, D) f32
    w1_ref, b1_ref,              # (D, 4D) bf16 ; (1, 4D) f32
    w2_ref, b2_ref,              # (4D, D) bf16 ; (1, D)  f32
    ln2w_ref, ln2b_ref,          # (1, D) f32
    o_ref,                       # (1, TQ, D)
    *, heads,
):
    f32 = jnp.float32
    bf16 = jnp.bfloat16

    xq = xq_ref[0]                                   # (TQ, D) f32
    xkv = xkv_ref[0]                                 # (S,  D) f32
    TQ, D = xq.shape
    S = xkv.shape[0]
    hd = D // heads

    # --- lane-dense QKV projections (full MXU width, f32 accumulation) ---
    q = jnp.dot(xq.astype(bf16), wq_ref[...],
                preferred_element_type=f32) + bq_ref[...]          # (TQ, D)
    kv = jnp.dot(xkv.astype(bf16), wkv_ref[...],
                 preferred_element_type=f32) + bkv_ref[...]        # (S, 2D)

    q = q.astype(bf16)
    kv = kv.astype(bf16)

    # Split into heads (cheap relayout; matmuls above already lane-dense).
    qh = jnp.stack([q[:, h * hd:(h + 1) * hd] for h in range(heads)], axis=0)           # (H, TQ, hd)
    kh = jnp.stack([kv[:, h * hd:(h + 1) * hd] for h in range(heads)], axis=0)          # (H, S, hd)
    vh = jnp.stack([kv[:, D + h * hd:D + (h + 1) * hd] for h in range(heads)], axis=0)  # (H, S, hd)

    # --- attention: head-batched contractions, softmax in f32 ---
    s = jnp.einsum("hqd,hkd->hqk", qh, kh, preferred_element_type=f32)  # (H, TQ, S)
    s = s - jnp.max(s, axis=-1, keepdims=True)
    p = jnp.exp(s)
    p = p * pl.reciprocal(jnp.sum(p, axis=-1, keepdims=True), approx=True)
    ctx = jnp.einsum("hqk,hkd->hqd", p.astype(bf16), vh,
                     preferred_element_type=f32)                        # (H, TQ, hd)

    # Merge heads along the lane dim -> (TQ, D); the head reduction is then
    # folded into a single (TQ,D)@(D,D) MXU contraction (f32 accumulator),
    # no (H,S,D) f32 intermediate and no cross-head vector reduce.
    ctx2 = jnp.concatenate([ctx[h] for h in range(heads)], axis=-1).astype(bf16)  # (TQ, D)
    attn = jnp.dot(ctx2, wo_ref[...], preferred_element_type=f32) + bo_ref[...]   # (TQ, D)

    # --- residual + norm1 (dropout = identity in eval mode) ---
    x1 = _layernorm(xq + attn, ln1w_ref[...], ln1b_ref[...])

    # --- feed-forward: Linear -> GELU(exact) -> Linear (bf16 MXU, f32 accum) ---
    h1 = jnp.dot(x1.astype(bf16), w1_ref[...], preferred_element_type=f32) + b1_ref[...]
    h1 = _gelu_exact(h1)
    ff = jnp.dot(h1.astype(bf16), w2_ref[...], preferred_element_type=f32) + b2_ref[...]

    # --- residual + norm2 ---
    x2 = _layernorm(x1 + ff, ln2w_ref[...], ln2b_ref[...])

    o_ref[0] = x2.astype(o_ref.dtype)


# -------------------------------- wrapper ------------------------------------

_PARAM_ORDER = ("wq", "bq", "wkv", "bkv", "wo", "bo",
                "ln1_w", "ln1_b", "w1", "b1", "w2", "b2", "ln2_w", "ln2_b")


def _vmem_limit_bytes():
    """~75% of this generation's VMEM (96-100 MiB on v5e/v6e, ~48 MiB on v7x)."""
    try:
        return int(0.75 * pltpu.get_tpu_info().vmem_capacity_bytes)
    except Exception:
        return 48 * 1024 * 1024


def _pick_q_tile(S):
    if S <= 256:
        return S
    if S % 256 == 0:
        return 256
    if S % 128 == 0:
        return 128
    return S


def transformer_block(x, kparams, heads, *, q_tile=None):
    B, S, D = x.shape
    if q_tile is None:
        q_tile = _pick_q_tile(S)
    assert S % q_tile == 0
    nq = S // q_tile

    kernel = functools.partial(transformer_block_kernel, heads=heads)
    params = [kparams[name] for name in _PARAM_ORDER]   # all 2-D

    def run(single_buffer_weights):
        in_specs = [
            pl.BlockSpec((1, q_tile, D), lambda b, qi: (b, qi, 0)),  # query tile of x
            pl.BlockSpec((1, S, D), lambda b, qi: (b, 0, 0)),        # full sequence for K/V
        ]
        for prm in params:
            if single_buffer_weights:
                # Grid-invariant weights: don't waste VMEM double-buffering them.
                spec = pl.BlockSpec(prm.shape, lambda b, qi: (0, 0),
                                    pipeline_mode=pl.Buffered(1))
            else:
                spec = pl.BlockSpec(prm.shape, lambda b, qi: (0, 0))
            in_specs.append(spec)

        fn = pl.pallas_call(
            kernel,
            out_shape=jax.ShapeDtypeStruct((B, S, D), x.dtype),
            grid=(B, nq),
            in_specs=in_specs,
            out_specs=pl.BlockSpec((1, q_tile, D), lambda b, qi: (b, qi, 0)),
            compiler_params=pltpu.CompilerParams(
                # Both axes parallel -> megacore can split work across v7x's 2 TCs.
                dimension_semantics=("parallel", "parallel"),
                vmem_limit_bytes=_vmem_limit_bytes(),
            ),
        )
        return jax.block_until_ready(fn(x, x, *params))

    try:
        return run(True)
    except Exception:
        # Fallback if single-buffering via pl.Buffered(1) is unsupported here.
        return run(False)


# ---------------------- parameters (PyTorch layout + prep) --------------------

def init_torch_params(key, dim):
    ks = jax.random.split(key, 8)
    std = 0.02
    f32 = jnp.float32
    return {
        "in_proj_w": jax.random.normal(ks[0], (3 * dim, dim), f32) * std,   # (3D, D)
        "in_proj_b": jax.random.normal(ks[1], (3 * dim,), f32) * std,
        "out_proj_w": jax.random.normal(ks[2], (dim, dim), f32) * std,      # (D, D)
        "out_proj_b": jax.random.normal(ks[3], (dim,), f32) * std,
        "ln1_w": jnp.ones((dim,), f32), "ln1_b": jnp.zeros((dim,), f32),
        "ff1_w": jax.random.normal(ks[4], (4 * dim, dim), f32) * std,       # (4D, D)
        "ff1_b": jax.random.normal(ks[5], (4 * dim,), f32) * std,
        "ff2_w": jax.random.normal(ks[6], (dim, 4 * dim), f32) * std,       # (D, 4D)
        "ff2_b": jax.random.normal(ks[7], (dim,), f32) * std,
        "ln2_w": jnp.ones((dim,), f32), "ln2_b": jnp.zeros((dim,), f32),
    }


def prepare_kernel_params(tp, dim, heads):
    """PyTorch-layout params -> kernel layout: lane-dense (D,D)/(D,2D) QKV
    weights, lane-dense (1,N) biases, bf16 weights, 1/sqrt(head_dim) folded
    into the Q projection."""
    hd = dim // heads
    scale = 1.0 / math.sqrt(hd)
    f32 = jnp.float32
    bf16 = jnp.bfloat16

    wq_rows = tp["in_proj_w"][0 * dim:1 * dim]        # (D, D) rows = q outputs (head-major)
    wk_rows = tp["in_proj_w"][1 * dim:2 * dim]
    wv_rows = tp["in_proj_w"][2 * dim:3 * dim]

    wq = (wq_rows.T * scale).astype(bf16)                                   # (D, D)
    wkv = jnp.concatenate([wk_rows.T, wv_rows.T], axis=1).astype(bf16)      # (D, 2D)
    bq = (tp["in_proj_b"][0 * dim:1 * dim] * scale).reshape(1, dim).astype(f32)
    bkv = tp["in_proj_b"][dim:].reshape(1, 2 * dim).astype(f32)

    wo = tp["out_proj_w"].T.astype(bf16)                                    # (D, D)
    bo = tp["out_proj_b"].reshape(1, dim).astype(f32)

    return {
        "wq": wq, "bq": bq, "wkv": wkv, "bkv": bkv, "wo": wo, "bo": bo,
        "ln1_w": tp["ln1_w"].reshape(1, dim).astype(f32),
        "ln1_b": tp["ln1_b"].reshape(1, dim).astype(f32),
        "w1": tp["ff1_w"].T.astype(bf16), "b1": tp["ff1_b"].reshape(1, 4 * dim).astype(f32),
        "w2": tp["ff2_w"].T.astype(bf16), "b2": tp["ff2_b"].reshape(1, dim).astype(f32),
        "ln2_w": tp["ln2_w"].reshape(1, dim).astype(f32),
        "ln2_b": tp["ln2_b"].reshape(1, dim).astype(f32),
    }


# --------------------------- pure-JAX reference -------------------------------

def reference(x, tp, heads):
    B, S, D = x.shape
    hd = D // heads

    def ln(z, w, b, eps=1e-5):
        mu = jnp.mean(z, -1, keepdims=True)
        zc = z - mu
        var = jnp.mean(zc * zc, -1, keepdims=True)
        return zc * jax.lax.rsqrt(var + eps) * w + b

    qkv = x @ tp["in_proj_w"].T + tp["in_proj_b"]
    q, k, v = qkv[..., :D], qkv[..., D:2 * D], qkv[..., 2 * D:]
    q = q.reshape(B, S, heads, hd).transpose(0, 2, 1, 3)
    k = k.reshape(B, S, heads, hd).transpose(0, 2, 1, 3)
    v = v.reshape(B, S, heads, hd).transpose(0, 2, 1, 3)
    s = (q @ k.transpose(0, 1, 3, 2)) / math.sqrt(hd)
    a = jax.nn.softmax(s, axis=-1)
    o = (a @ v).transpose(0, 2, 1, 3).reshape(B, S, D)
    o = o @ tp["out_proj_w"].T + tp["out_proj_b"]
    x1 = ln(x + o, tp["ln1_w"], tp["ln1_b"])
    h1 = jax.nn.gelu(x1 @ tp["ff1_w"].T + tp["ff1_b"], approximate=False)
    ff = h1 @ tp["ff2_w"].T + tp["ff2_b"]
    return ln(x1 + ff, tp["ln2_w"], tp["ln2_b"])


# ----------------------------------- main -------------------------------------

if __name__ == "__main__":
    B, S, D, HEADS = 2, 8, 32, 4
    key = jax.random.PRNGKey(0)
    kx, kp = jax.random.split(key)
    x = jax.random.normal(kx, (B, S, D), jnp.float32)

    tparams = init_torch_params(kp, D)
    kparams = prepare_kernel_params(tparams, D, HEADS)

    out = jax.block_until_ready(transformer_block(x, kparams, HEADS))
    ref = jax.block_until_ready(reference(x, tparams, HEADS))

    max_err = float(jnp.max(jnp.abs(out - ref)))
    assert out.shape == (B, S, D) and out.dtype == jnp.float32
    # bf16 MXU operands with f32 accumulation -> small deviation from f32 ref.
    assert max_err < 2e-2, f"mismatch vs reference: {max_err}"
    print("KERNEL_OK")
</pallas_src>

<mosaic_0001>
module attributes {stable_mosaic.version = 11 : i64} {
  func.func @transformer_block_kernel(%arg0: i32, %arg1: i32, %arg2: memref<1x8x32xf32, #tpu.memory_space<vmem>>, %arg3: memref<1x8x32xf32, #tpu.memory_space<vmem>>, %arg4: memref<32x32xbf16, #tpu.memory_space<vmem>>, %arg5: memref<1x32xf32, #tpu.memory_space<vmem>>, %arg6: memref<32x64xbf16, #tpu.memory_space<vmem>>, %arg7: memref<1x64xf32, #tpu.memory_space<vmem>>, %arg8: memref<32x32xbf16, #tpu.memory_space<vmem>>, %arg9: memref<1x32xf32, #tpu.memory_space<vmem>>, %arg10: memref<1x32xf32, #tpu.memory_space<vmem>>, %arg11: memref<1x32xf32, #tpu.memory_space<vmem>>, %arg12: memref<32x128xbf16, #tpu.memory_space<vmem>>, %arg13: memref<1x128xf32, #tpu.memory_space<vmem>>, %arg14: memref<128x32xbf16, #tpu.memory_space<vmem>>, %arg15: memref<1x32xf32, #tpu.memory_space<vmem>>, %arg16: memref<1x32xf32, #tpu.memory_space<vmem>>, %arg17: memref<1x32xf32, #tpu.memory_space<vmem>>, %arg18: memref<1x8x32xf32, #tpu.memory_space<vmem>>) attributes {dimension_semantics = [#tpu.dimension_semantics<parallel>, #tpu.dimension_semantics<parallel>], iteration_bounds = array<i64: 2, 1>, scalar_prefetch = 0 : i64, scratch_operands = 0 : i64, tpu.core_type = #tpu.core_type<tc>, window_params = [{transform_indices = @transform_0, window_bounds = array<i64: 1, 8, 32>}, {transform_indices = @transform_1, window_bounds = array<i64: 1, 8, 32>}, {pipeline_mode = #tpu.pipeline_mode<synchronous>, transform_indices = @transform_2, window_bounds = array<i64: 32, 32>}, {pipeline_mode = #tpu.pipeline_mode<synchronous>, transform_indices = @transform_3, window_bounds = array<i64: 1, 32>}, {pipeline_mode = #tpu.pipeline_mode<synchronous>, transform_indices = @transform_4, window_bounds = array<i64: 32, 64>}, {pipeline_mode = #tpu.pipeline_mode<synchronous>, transform_indices = @transform_5, window_bounds = array<i64: 1, 64>}, {pipeline_mode = #tpu.pipeline_mode<synchronous>, transform_indices = @transform_6, window_bounds = array<i64: 32, 32>}, {pipeline_mode = #tpu.pipeline_mode<synchronous>, transform_indices = @transform_7, window_bounds = array<i64: 1, 32>}, {pipeline_mode = #tpu.pipeline_mode<synchronous>, transform_indices = @transform_8, window_bounds = array<i64: 1, 32>}, {pipeline_mode = #tpu.pipeline_mode<synchronous>, transform_indices = @transform_9, window_bounds = array<i64: 1, 32>}, {pipeline_mode = #tpu.pipeline_mode<synchronous>, transform_indices = @transform_10, window_bounds = array<i64: 32, 128>}, {pipeline_mode = #tpu.pipeline_mode<synchronous>, transform_indices = @transform_11, window_bounds = array<i64: 1, 128>}, {pipeline_mode = #tpu.pipeline_mode<synchronous>, transform_indices = @transform_12, window_bounds = array<i64: 128, 32>}, {pipeline_mode = #tpu.pipeline_mode<synchronous>, transform_indices = @transform_13, window_bounds = array<i64: 1, 32>}, {pipeline_mode = #tpu.pipeline_mode<synchronous>, transform_indices = @transform_14, window_bounds = array<i64: 1, 32>}, {pipeline_mode = #tpu.pipeline_mode<synchronous>, transform_indices = @transform_15, window_bounds = array<i64: 1, 32>}, {transform_indices = @transform_16, window_bounds = array<i64: 1, 8, 32>}]} {
    %c0 = arith.constant 0 : index
    %c0_0 = arith.constant 0 : index
    %c0_1 = arith.constant 0 : index
    %0 = vector.load %arg2[%c0, %c0_0, %c0_1] : memref<1x8x32xf32, #tpu.memory_space<vmem>>, vector<1x8x32xf32>
    %1 = vector.shape_cast %0 : vector<1x8x32xf32> to vector<8x32xf32>
    %c0_2 = arith.constant 0 : index
    %c0_3 = arith.constant 0 : index
    %c0_4 = arith.constant 0 : index
    %2 = vector.load %arg3[%c0_2, %c0_3, %c0_4] : memref<1x8x32xf32, #tpu.memory_space<vmem>>, vector<1x8x32xf32>
    %3 = vector.shape_cast %2 : vector<1x8x32xf32> to vector<8x32xf32>
    %4 = arith.truncf %1 : vector<8x32xf32> to vector<8x32xbf16>
    %c0_5 = arith.constant 0 : index
    %c0_6 = arith.constant 0 : index
    %5 = vector.load %arg4[%c0_5, %c0_6] : memref<32x32xbf16, #tpu.memory_space<vmem>>, vector<32x32xbf16>
    %cst = arith.constant dense<0.000000e+00> : vector<8x32xf32>
    %6 = tpu.matmul %4, %5, %cst {dimension_numbers = #tpu.dot_dimension_numbers<[1], [0], [0], [1], [0, 0, 1, 1], [], []>} : vector<8x32xbf16>, vector<32x32xbf16>, vector<8x32xf32> -> vector<8x32xf32>
    %c0_7 = arith.constant 0 : index
    %c0_8 = arith.constant 0 : index
    %7 = vector.load %arg5[%c0_7, %c0_8] : memref<1x32xf32, #tpu.memory_space<vmem>>, vector<1x32xf32>
    %8 = vector.broadcast %7 : vector<1x32xf32> to vector<8x32xf32>
    %9 = arith.addf %6, %8 : vector<8x32xf32>
    %10 = arith.truncf %3 : vector<8x32xf32> to vector<8x32xbf16>
    %c0_9 = arith.constant 0 : index
    %c0_10 = arith.constant 0 : index
    %11 = vector.load %arg6[%c0_9, %c0_10] : memref<32x64xbf16, #tpu.memory_space<vmem>>, vector<32x64xbf16>
    %cst_11 = arith.constant dense<0.000000e+00> : vector<8x64xf32>
    %12 = tpu.matmul %10, %11, %cst_11 {dimension_numbers = #tpu.dot_dimension_numbers<[1], [0], [0], [1], [0, 0, 1, 1], [], []>} : vector<8x32xbf16>, vector<32x64xbf16>, vector<8x64xf32> -> vector<8x64xf32>
    %c0_12 = arith.constant 0 : index
    %c0_13 = arith.constant 0 : index
    %13 = vector.load %arg7[%c0_12, %c0_13] : memref<1x64xf32, #tpu.memory_space<vmem>>, vector<1x64xf32>
    %14 = vector.broadcast %13 : vector<1x64xf32> to vector<8x64xf32>
    %15 = arith.addf %12, %14 : vector<8x64xf32>
    %16 = arith.truncf %9 : vector<8x32xf32> to vector<8x32xbf16>
    %17 = arith.truncf %15 : vector<8x64xf32> to vector<8x64xbf16>
    %18 = vector.extract_strided_slice %16 {offsets = [0, 0], sizes = [8, 8], strides = [1, 1]} : vector<8x32xbf16> to vector<8x8xbf16>
    %19 = vector.extract_strided_slice %16 {offsets = [0, 8], sizes = [8, 8], strides = [1, 1]} : vector<8x32xbf16> to vector<8x8xbf16>
    %20 = vector.extract_strided_slice %16 {offsets = [0, 16], sizes = [8, 8], strides = [1, 1]} : vector<8x32xbf16> to vector<8x8xbf16>
    %21 = vector.extract_strided_slice %16 {offsets = [0, 24], sizes = [8, 8], strides = [1, 1]} : vector<8x32xbf16> to vector<8x8xbf16>
    %22 = vector.shape_cast %18 : vector<8x8xbf16> to vector<1x8x8xbf16>
    %23 = vector.shape_cast %19 : vector<8x8xbf16> to vector<1x8x8xbf16>
    %24 = vector.shape_cast %20 : vector<8x8xbf16> to vector<1x8x8xbf16>
    %25 = vector.shape_cast %21 : vector<8x8xbf16> to vector<1x8x8xbf16>
    %26 = tpu.concatenate %22, %23, %24, %25 in 0 : vector<1x8x8xbf16>, vector<1x8x8xbf16>, vector<1x8x8xbf16>, vector<1x8x8xbf16> -> vector<4x8x8xbf16>
    %27 = vector.extract_strided_slice %17 {offsets = [0, 0], sizes = [8, 8], strides = [1, 1]} : vector<8x64xbf16> to vector<8x8xbf16>
    %28 = vector.extract_strided_slice %17 {offsets = [0, 8], sizes = [8, 8], strides = [1, 1]} : vector<8x64xbf16> to vector<8x8xbf16>
    %29 = vector.extract_strided_slice %17 {offsets = [0, 16], sizes = [8, 8], strides = [1, 1]} : vector<8x64xbf16> to vector<8x8xbf16>
    %30 = vector.extract_strided_slice %17 {offsets = [0, 24], sizes = [8, 8], strides = [1, 1]} : vector<8x64xbf16> to vector<8x8xbf16>
    %31 = vector.shape_cast %27 : vector<8x8xbf16> to vector<1x8x8xbf16>
    %32 = vector.shape_cast %28 : vector<8x8xbf16> to vector<1x8x8xbf16>
    %33 = vector.shape_cast %29 : vector<8x8xbf16> to vector<1x8x8xbf16>
    %34 = vector.shape_cast %30 : vector<8x8xbf16> to vector<1x8x8xbf16>
    %35 = tpu.concatenate %31, %32, %33, %34 in 0 : vector<1x8x8xbf16>, vector<1x8x8xbf16>, vector<1x8x8xbf16>, vector<1x8x8xbf16> -> vector<4x8x8xbf16>
    %36 = vector.extract_strided_slice %17 {offsets = [0, 32], sizes = [8, 8], strides = [1, 1]} : vector<8x64xbf16> to vector<8x8xbf16>
    %37 = vector.extract_strided_slice %17 {offsets = [0, 40], sizes = [8, 8], strides = [1, 1]} : vector<8x64xbf16> to vector<8x8xbf16>
    %38 = vector.extract_strided_slice %17 {offsets = [0, 48], sizes = [8, 8], strides = [1, 1]} : vector<8x64xbf16> to vector<8x8xbf16>
    %39 = vector.extract_strided_slice %17 {offsets = [0, 56], sizes = [8, 8], strides = [1, 1]} : vector<8x64xbf16> to vector<8x8xbf16>
    %40 = vector.shape_cast %36 : vector<8x8xbf16> to vector<1x8x8xbf16>
    %41 = vector.shape_cast %37 : vector<8x8xbf16> to vector<1x8x8xbf16>
    %42 = vector.shape_cast %38 : vector<8x8xbf16> to vector<1x8x8xbf16>
    %43 = vector.shape_cast %39 : vector<8x8xbf16> to vector<1x8x8xbf16>
    %44 = tpu.concatenate %40, %41, %42, %43 in 0 : vector<1x8x8xbf16>, vector<1x8x8xbf16>, vector<1x8x8xbf16>, vector<1x8x8xbf16> -> vector<4x8x8xbf16>
    "tpu.trace_start"() <{level = 10 : i32, message = "hqd,hkd->hqk"}> : () -> ()
    %cst_14 = arith.constant dense<0.000000e+00> : vector<4x8x8xf32>
    %45 = tpu.matmul %26, %35, %cst_14 {dimension_numbers = #tpu.dot_dimension_numbers<[2], [2], [1], [1], [0, 0, 0, 1, 1, 1], [0], [0]>} : vector<4x8x8xbf16>, vector<4x8x8xbf16>, vector<4x8x8xf32> -> vector<4x8x8xf32>
    "tpu.trace_stop"() : () -> ()
    %cst_15 = arith.constant dense<0xFF800000> : vector<4x8xf32>
    %46 = vector.multi_reduction <maximumf>, %45, %cst_15 [2] : vector<4x8x8xf32> to vector<4x8xf32>
    %47 = vector.shape_cast %46 : vector<4x8xf32> to vector<4x8x1xf32>
    %48 = vector.broadcast %47 : vector<4x8x1xf32> to vector<4x8x8xf32>
    %49 = arith.subf %45, %48 : vector<4x8x8xf32>
    %50 = math.exp %49 : vector<4x8x8xf32>
    %cst_16 = arith.constant dense<0.000000e+00> : vector<4x8xf32>
    %51 = vector.multi_reduction <add>, %50, %cst_16 [2] : vector<4x8x8xf32> to vector<4x8xf32>
    %52 = vector.shape_cast %51 : vector<4x8xf32> to vector<4x8x1xf32>
    %53 = tpu.reciprocal %52 {approx = true} : vector<4x8x1xf32> -> vector<4x8x1xf32>
    %54 = vector.broadcast %53 : vector<4x8x1xf32> to vector<4x8x8xf32>
    %55 = arith.mulf %50, %54 : vector<4x8x8xf32>
    %56 = arith.truncf %55 : vector<4x8x8xf32> to vector<4x8x8xbf16>
    "tpu.trace_start"() <{level = 10 : i32, message = "hqk,hkd->hqd"}> : () -> ()
    %cst_17 = arith.constant dense<0.000000e+00> : vector<4x8x8xf32>
    %57 = tpu.matmul %56, %44, %cst_17 {dimension_numbers = #tpu.dot_dimension_numbers<[2], [1], [1], [2], [0, 0, 0, 1, 1, 2], [0], [0]>} : vector<4x8x8xbf16>, vector<4x8x8xbf16>, vector<4x8x8xf32> -> vector<4x8x8xf32>
    "tpu.trace_stop"() : () -> ()
    %58 = vector.extract_strided_slice %57 {offsets = [0, 0, 0], sizes = [1, 8, 8], strides = [1, 1, 1]} : vector<4x8x8xf32> to vector<1x8x8xf32>
    %59 = vector.shape_cast %58 : vector<1x8x8xf32> to vector<8x8xf32>
    %60 = vector.extract_strided_slice %57 {offsets = [1, 0, 0], sizes = [1, 8, 8], strides = [1, 1, 1]} : vector<4x8x8xf32> to vector<1x8x8xf32>
    %61 = vector.shape_cast %60 : vector<1x8x8xf32> to vector<8x8xf32>
    %62 = vector.extract_strided_slice %57 {offsets = [2, 0, 0], sizes = [1, 8, 8], strides = [1, 1, 1]} : vector<4x8x8xf32> to vector<1x8x8xf32>
    %63 = vector.shape_cast %62 : vector<1x8x8xf32> to vector<8x8xf32>
    %64 = vector.extract_strided_slice %57 {offsets = [3, 0, 0], sizes = [1, 8, 8], strides = [1, 1, 1]} : vector<4x8x8xf32> to vector<1x8x8xf32>
    %65 = vector.shape_cast %64 : vector<1x8x8xf32> to vector<8x8xf32>
    %66 = tpu.concatenate %59, %61, %63, %65 in 1 : vector<8x8xf32>, vector<8x8xf32>, vector<8x8xf32>, vector<8x8xf32> -> vector<8x32xf32>
    %67 = arith.truncf %66 : vector<8x32xf32> to vector<8x32xbf16>
    %c0_18 = arith.constant 0 : index
    %c0_19 = arith.constant 0 : index
    %68 = vector.load %arg8[%c0_18, %c0_19] : memref<32x32xbf16, #tpu.memory_space<vmem>>, vector<32x32xbf16>
    %cst_20 = arith.constant dense<0.000000e+00> : vector<8x32xf32>
    %69 = tpu.matmul %67, %68, %cst_20 {dimension_numbers = #tpu.dot_dimension_numbers<[1], [0], [0], [1], [0, 0, 1, 1], [], []>} : vector<8x32xbf16>, vector<32x32xbf16>, vector<8x32xf32> -> vector<8x32xf32>
    %c0_21 = arith.constant 0 : index
    %c0_22 = arith.constant 0 : index
    %70 = vector.load %arg9[%c0_21, %c0_22] : memref<1x32xf32, #tpu.memory_space<vmem>>, vector<1x32xf32>
    %71 = vector.broadcast %70 : vector<1x32xf32> to vector<8x32xf32>
    %72 = arith.addf %69, %71 : vector<8x32xf32>
    %73 = arith.addf %1, %72 : vector<8x32xf32>
    %c0_23 = arith.constant 0 : index
    %c0_24 = arith.constant 0 : index
    %74 = vector.load %arg10[%c0_23, %c0_24] : memref<1x32xf32, #tpu.memory_space<vmem>>, vector<1x32xf32>
    %c0_25 = arith.constant 0 : index
    %c0_26 = arith.constant 0 : index
    %75 = vector.load %arg11[%c0_25, %c0_26] : memref<1x32xf32, #tpu.memory_space<vmem>>, vector<1x32xf32>
    %cst_27 = arith.constant dense<0.000000e+00> : vector<8xf32>
    %76 = vector.multi_reduction <add>, %73, %cst_27 [1] : vector<8x32xf32> to vector<8xf32>
    %77 = vector.shape_cast %76 : vector<8xf32> to vector<8x1xf32>
    %cst_28 = arith.constant 3.200000e+01 : f32
    %78 = vector.broadcast %cst_28 : f32 to vector<8x1xf32>
    %79 = arith.divf %77, %78 : vector<8x1xf32>
    %80 = vector.broadcast %79 : vector<8x1xf32> to vector<8x32xf32>
    %81 = arith.subf %73, %80 : vector<8x32xf32>
    %82 = arith.mulf %81, %81 : vector<8x32xf32>
    %cst_29 = arith.constant dense<0.000000e+00> : vector<8xf32>
    %83 = vector.multi_reduction <add>, %82, %cst_29 [1] : vector<8x32xf32> to vector<8xf32>
    %84 = vector.shape_cast %83 : vector<8xf32> to vector<8x1xf32>
    %cst_30 = arith.constant 3.200000e+01 : f32
    %85 = vector.broadcast %cst_30 : f32 to vector<8x1xf32>
    %86 = arith.divf %84, %85 : vector<8x1xf32>
    %cst_31 = arith.constant 9.99999974E-6 : f32
    %87 = vector.broadcast %cst_31 : f32 to vector<8x1xf32>
    %88 = arith.addf %86, %87 : vector<8x1xf32>
    %89 = math.rsqrt %88 : vector<8x1xf32>
    %90 = vector.broadcast %89 : vector<8x1xf32> to vector<8x32xf32>
    %91 = arith.mulf %81, %90 : vector<8x32xf32>
    %92 = vector.broadcast %74 : vector<1x32xf32> to vector<8x32xf32>
    %93 = arith.mulf %91, %92 : vector<8x32xf32>
    %94 = vector.broadcast %75 : vector<1x32xf32> to vector<8x32xf32>
    %95 = arith.addf %93, %94 : vector<8x32xf32>
    %96 = arith.truncf %95 : vector<8x32xf32> to vector<8x32xbf16>
    %c0_32 = arith.constant 0 : index
    %c0_33 = arith.constant 0 : index
    %97 = vector.load %arg12[%c0_32, %c0_33] : memref<32x128xbf16, #tpu.memory_space<vmem>>, vector<32x128xbf16>
    %cst_34 = arith.constant dense<0.000000e+00> : vector<8x128xf32>
    %98 = tpu.matmul %96, %97, %cst_34 {dimension_numbers = #tpu.dot_dimension_numbers<[1], [0], [0], [1], [0, 0, 1, 1], [], []>} : vector<8x32xbf16>, vector<32x128xbf16>, vector<8x128xf32> -> vector<8x128xf32>
    %c0_35 = arith.constant 0 : index
    %c0_36 = arith.constant 0 : index
    %99 = vector.load %arg13[%c0_35, %c0_36] : memref<1x128xf32, #tpu.memory_space<vmem>>, vector<1x128xf32>
    %100 = vector.broadcast %99 : vector<1x128xf32> to vector<8x128xf32>
    %101 = arith.addf %98, %100 : vector<8x128xf32>
    %cst_37 = arith.constant 5.000000e-01 : f32
    %102 = vector.broadcast %cst_37 : f32 to vector<8x128xf32>
    %103 = arith.mulf %102, %101 : vector<8x128xf32>
    %cst_38 = arith.constant 0.707106769 : f32
    %104 = vector.broadcast %cst_38 : f32 to vector<8x128xf32>
    %105 = arith.mulf %101, %104 : vector<8x128xf32>
    %cst_39 = arith.constant 0.000000e+00 : f32
    %106 = vector.broadcast %cst_39 : f32 to vector<8x128xf32>
    %107 = arith.cmpf oge, %105, %106 : vector<8x128xf32>
    %cst_40 = arith.constant 1.000000e+00 : f32
    %cst_41 = arith.constant -1.000000e+00 : f32
    %108 = vector.broadcast %cst_40 : f32 to vector<8x128xf32>
    %109 = vector.broadcast %cst_41 : f32 to vector<8x128xf32>
    %110 = arith.select %107, %108, %109 : vector<8x128xi1>, vector<8x128xf32>
    %111 = math.absf %105 : vector<8x128xf32>
    %cst_42 = arith.constant 0.327591091 : f32
    %112 = vector.broadcast %cst_42 : f32 to vector<8x128xf32>
    %113 = arith.mulf %112, %111 : vector<8x128xf32>
    %cst_43 = arith.constant 1.000000e+00 : f32
    %114 = vector.broadcast %cst_43 : f32 to vector<8x128xf32>
    %115 = arith.addf %114, %113 : vector<8x128xf32>
    %cst_44 = arith.constant 1.000000e+00 : f32
    %116 = vector.broadcast %cst_44 : f32 to vector<8x128xf32>
    %117 = arith.divf %116, %115 : vector<8x128xf32>
    %cst_45 = arith.constant 1.06140542 : f32
    %118 = vector.broadcast %cst_45 : f32 to vector<8x128xf32>
    %119 = arith.mulf %118, %117 : vector<8x128xf32>
    %cst_46 = arith.constant -1.45315206 : f32
    %120 = vector.broadcast %cst_46 : f32 to vector<8x128xf32>
    %121 = arith.addf %119, %120 : vector<8x128xf32>
    %122 = arith.mulf %121, %117 : vector<8x128xf32>
    %cst_47 = arith.constant 1.42141378 : f32
    %123 = vector.broadcast %cst_47 : f32 to vector<8x128xf32>
    %124 = arith.addf %122, %123 : vector<8x128xf32>
    %125 = arith.mulf %124, %117 : vector<8x128xf32>
    %cst_48 = arith.constant -0.284496725 : f32
    %126 = vector.broadcast %cst_48 : f32 to vector<8x128xf32>
    %127 = arith.addf %125, %126 : vector<8x128xf32>
    %128 = arith.mulf %127, %117 : vector<8x128xf32>
    %cst_49 = arith.constant 0.254829586 : f32
    %129 = vector.broadcast %cst_49 : f32 to vector<8x128xf32>
    %130 = arith.addf %128, %129 : vector<8x128xf32>
    %131 = arith.mulf %130, %117 : vector<8x128xf32>
    %cst_50 = arith.constant 0.000000e+00 : f32
    %132 = vector.broadcast %cst_50 : f32 to vector<8x128xf32>
    %133 = arith.subf %132, %111 : vector<8x128xf32>
    %134 = arith.mulf %133, %111 : vector<8x128xf32>
    %135 = math.exp %134 : vector<8x128xf32>
    %136 = arith.mulf %131, %135 : vector<8x128xf32>
    %cst_51 = arith.constant 1.000000e+00 : f32
    %137 = vector.broadcast %cst_51 : f32 to vector<8x128xf32>
    %138 = arith.subf %137, %136 : vector<8x128xf32>
    %139 = arith.mulf %110, %138 : vector<8x128xf32>
    %cst_52 = arith.constant 1.000000e+00 : f32
    %140 = vector.broadcast %cst_52 : f32 to vector<8x128xf32>
    %141 = arith.addf %140, %139 : vector<8x128xf32>
    %142 = arith.mulf %103, %141 : vector<8x128xf32>
    %143 = arith.truncf %142 : vector<8x128xf32> to vector<8x128xbf16>
    %c0_53 = arith.constant 0 : index
    %c0_54 = arith.constant 0 : index
    %144 = vector.load %arg14[%c0_53, %c0_54] : memref<128x32xbf16, #tpu.memory_space<vmem>>, vector<128x32xbf16>
    %cst_55 = arith.constant dense<0.000000e+00> : vector<8x32xf32>
    %145 = tpu.matmul %143, %144, %cst_55 {dimension_numbers = #tpu.dot_dimension_numbers<[1], [0], [0], [1], [0, 0, 1, 1], [], []>} : vector<8x128xbf16>, vector<128x32xbf16>, vector<8x32xf32> -> vector<8x32xf32>
    %c0_56 = arith.constant 0 : index
    %c0_57 = arith.constant 0 : index
    %146 = vector.load %arg15[%c0_56, %c0_57] : memref<1x32xf32, #tpu.memory_space<vmem>>, vector<1x32xf32>
    %147 = vector.broadcast %146 : vector<1x32xf32> to vector<8x32xf32>
    %148 = arith.addf %145, %147 : vector<8x32xf32>
    %149 = arith.addf %95, %148 : vector<8x32xf32>
    %c0_58 = arith.constant 0 : index
    %c0_59 = arith.constant 0 : index
    %150 = vector.load %arg16[%c0_58, %c0_59] : memref<1x32xf32, #tpu.memory_space<vmem>>, vector<1x32xf32>
    %c0_60 = arith.constant 0 : index
    %c0_61 = arith.constant 0 : index
    %151 = vector.load %arg17[%c0_60, %c0_61] : memref<1x32xf32, #tpu.memory_space<vmem>>, vector<1x32xf32>
    %cst_62 = arith.constant dense<0.000000e+00> : vector<8xf32>
    %152 = vector.multi_reduction <add>, %149, %cst_62 [1] : vector<8x32xf32> to vector<8xf32>
    %153 = vector.shape_cast %152 : vector<8xf32> to vector<8x1xf32>
    %cst_63 = arith.constant 3.200000e+01 : f32
    %154 = vector.broadcast %cst_63 : f32 to vector<8x1xf32>
    %155 = arith.divf %153, %154 : vector<8x1xf32>
    %156 = vector.broadcast %155 : vector<8x1xf32> to vector<8x32xf32>
    %157 = arith.subf %149, %156 : vector<8x32xf32>
    %158 = arith.mulf %157, %157 : vector<8x32xf32>
    %cst_64 = arith.constant dense<0.000000e+00> : vector<8xf32>
    %159 = vector.multi_reduction <add>, %158, %cst_64 [1] : vector<8x32xf32> to vector<8xf32>
    %160 = vector.shape_cast %159 : vector<8xf32> to vector<8x1xf32>
    %cst_65 = arith.constant 3.200000e+01 : f32
    %161 = vector.broadcast %cst_65 : f32 to vector<8x1xf32>
    %162 = arith.divf %160, %161 : vector<8x1xf32>
    %cst_66 = arith.constant 9.99999974E-6 : f32
    %163 = vector.broadcast %cst_66 : f32 to vector<8x1xf32>
    %164 = arith.addf %162, %163 : vector<8x1xf32>
    %165 = math.rsqrt %164 : vector<8x1xf32>
    %166 = vector.broadcast %165 : vector<8x1xf32> to vector<8x32xf32>
    %167 = arith.mulf %157, %166 : vector<8x32xf32>
    %168 = vector.broadcast %150 : vector<1x32xf32> to vector<8x32xf32>
    %169 = arith.mulf %167, %168 : vector<8x32xf32>
    %170 = vector.broadcast %151 : vector<1x32xf32> to vector<8x32xf32>
    %171 = arith.addf %169, %170 : vector<8x32xf32>
    %c0_67 = arith.constant 0 : index
    %c0_68 = arith.constant 0 : index
    %c0_69 = arith.constant 0 : index
    %172 = vector.load %arg18[%c0_67, %c0_68, %c0_69] : memref<1x8x32xf32, #tpu.memory_space<vmem>>, vector<1x8x32xf32>
    %173 = vector.shape_cast %172 : vector<1x8x32xf32> to vector<8x32xf32>
    %174 = vector.shape_cast %171 : vector<8x32xf32> to vector<1x8x32xf32>
    tpu.vector_store %arg18[%c0_67, %c0_68, %c0_69], %174 {strides = array<i32>} : memref<1x8x32xf32, #tpu.memory_space<vmem>>, vector<1x8x32xf32>,
    return
  }
  func.func @transform_0(%arg0: i32, %arg1: i32) -> (i32, i32, i32) {
    %c0_i32 = arith.constant 0 : i32
    %c0_i32_0 = arith.constant 0 : i32
    return %arg0, %arg1, %c0_i32 : i32, i32, i32
  }
  func.func @transform_1(%arg0: i32, %arg1: i32) -> (i32, i32, i32) {
    %c0_i32 = arith.constant 0 : i32
    %c0_i32_0 = arith.constant 0 : i32
    %c0_i32_1 = arith.constant 0 : i32
    return %arg0, %c0_i32, %c0_i32_0 : i32, i32, i32
  }
  func.func @transform_2(%arg0: i32, %arg1: i32) -> (i32, i32) {
    %c0_i32 = arith.constant 0 : i32
    %c0_i32_0 = arith.constant 0 : i32
    %c0_i32_1 = arith.constant 0 : i32
    return %c0_i32, %c0_i32_0 : i32, i32
  }
  func.func @transform_3(%arg0: i32, %arg1: i32) -> (i32, i32) {
    %c0_i32 = arith.constant 0 : i32
    %c0_i32_0 = arith.constant 0 : i32
    %c0_i32_1 = arith.constant 0 : i32
    return %c0_i32, %c0_i32_0 : i32, i32
  }
  func.func @transform_4(%arg0: i32, %arg1: i32) -> (i32, i32) {
    %c0_i32 = arith.constant 0 : i32
    %c0_i32_0 = arith.constant 0 : i32
    %c0_i32_1 = arith.constant 0 : i32
    return %c0_i32, %c0_i32_0 : i32, i32
  }
  func.func @transform_5(%arg0: i32, %arg1: i32) -> (i32, i32) {
    %c0_i32 = arith.constant 0 : i32
    %c0_i32_0 = arith.constant 0 : i32
    %c0_i32_1 = arith.constant 0 : i32
    return %c0_i32, %c0_i32_0 : i32, i32
  }
  func.func @transform_6(%arg0: i32, %arg1: i32) -> (i32, i32) {
    %c0_i32 = arith.constant 0 : i32
    %c0_i32_0 = arith.constant 0 : i32
    %c0_i32_1 = arith.constant 0 : i32
    return %c0_i32, %c0_i32_0 : i32, i32
  }
  func.func @transform_7(%arg0: i32, %arg1: i32) -> (i32, i32) {
    %c0_i32 = arith.constant 0 : i32
    %c0_i32_0 = arith.constant 0 : i32
    %c0_i32_1 = arith.constant 0 : i32
    return %c0_i32, %c0_i32_0 : i32, i32
  }
  func.func @transform_8(%arg0: i32, %arg1: i32) -> (i32, i32) {
    %c0_i32 = arith.constant 0 : i32
    %c0_i32_0 = arith.constant 0 : i32
    %c0_i32_1 = arith.constant 0 : i32
    return %c0_i32, %c0_i32_0 : i32, i32
  }
  func.func @transform_9(%arg0: i32, %arg1: i32) -> (i32, i32) {
    %c0_i32 = arith.constant 0 : i32
    %c0_i32_0 = arith.constant 0 : i32
    %c0_i32_1 = arith.constant 0 : i32
    return %c0_i32, %c0_i32_0 : i32, i32
  }
  func.func @transform_10(%arg0: i32, %arg1: i32) -> (i32, i32) {
    %c0_i32 = arith.constant 0 : i32
    %c0_i32_0 = arith.constant 0 : i32
    %c0_i32_1 = arith.constant 0 : i32
    return %c0_i32, %c0_i32_0 : i32, i32
  }
  func.func @transform_11(%arg0: i32, %arg1: i32) -> (i32, i32) {
    %c0_i32 = arith.constant 0 : i32
    %c0_i32_0 = arith.constant 0 : i32
    %c0_i32_1 = arith.constant 0 : i32
    return %c0_i32, %c0_i32_0 : i32, i32
  }
  func.func @transform_12(%arg0: i32, %arg1: i32) -> (i32, i32) {
    %c0_i32 = arith.constant 0 : i32
    %c0_i32_0 = arith.constant 0 : i32
    %c0_i32_1 = arith.constant 0 : i32
    return %c0_i32, %c0_i32_0 : i32, i32
  }
  func.func @transform_13(%arg0: i32, %arg1: i32) -> (i32, i32) {
    %c0_i32 = arith.constant 0 : i32
    %c0_i32_0 = arith.constant 0 : i32
    %c0_i32_1 = arith.constant 0 : i32
    return %c0_i32, %c0_i32_0 : i32, i32
  }
  func.func @transform_14(%arg0: i32, %arg1: i32) -> (i32, i32) {
    %c0_i32 = arith.constant 0 : i32
    %c0_i32_0 = arith.constant 0 : i32
    %c0_i32_1 = arith.constant 0 : i32
    return %c0_i32, %c0_i32_0 : i32, i32
  }
  func.func @transform_15(%arg0: i32, %arg1: i32) -> (i32, i32) {
    %c0_i32 = arith.constant 0 : i32
    %c0_i32_0 = arith.constant 0 : i32
    %c0_i32_1 = arith.constant 0 : i32
    return %c0_i32, %c0_i32_0 : i32, i32
  }
  func.func @transform_16(%arg0: i32, %arg1: i32) -> (i32, i32, i32) {
    %c0_i32 = arith.constant 0 : i32
    %c0_i32_0 = arith.constant 0 : i32
    return %arg0, %arg1, %c0_i32 : i32, i32, i32
  }
}

module attributes {stable_mosaic.version = 11 : i64} {
  func.func @transformer_block_kernel(%arg0: i32, %arg1: i32, %arg2: memref<1x8x32xf32, #tpu.memory_space<vmem>>, %arg3: memref<1x8x32xf32, #tpu.memory_space<vmem>>, %arg4: memref<32x32xbf16, #tpu.memory_space<vmem>>, %arg5: memref<1x32xf32, #tpu.memory_space<vmem>>, %arg6: memref<32x64xbf16, #tpu.memory_space<vmem>>, %arg7: memref<1x64xf32, #tpu.memory_space<vmem>>, %arg8: memref<32x32xbf16, #tpu.memory_space<vmem>>, %arg9: memref<1x32xf32, #tpu.memory_space<vmem>>, %arg10: memref<1x32xf32, #tpu.memory_space<vmem>>, %arg11: memref<1x32xf32, #tpu.memory_space<vmem>>, %arg12: memref<32x128xbf16, #tpu.memory_space<vmem>>, %arg13: memref<1x128xf32, #tpu.memory_space<vmem>>, %arg14: memref<128x32xbf16, #tpu.memory_space<vmem>>, %arg15: memref<1x32xf32, #tpu.memory_space<vmem>>, %arg16: memref<1x32xf32, #tpu.memory_space<vmem>>, %arg17: memref<1x32xf32, #tpu.memory_space<vmem>>, %arg18: memref<1x8x32xf32, #tpu.memory_space<vmem>>) attributes {dimension_semantics = [#tpu.dimension_semantics<parallel>, #tpu.dimension_semantics<parallel>], iteration_bounds = array<i64: 2, 1>, scalar_prefetch = 0 : i64, scratch_operands = 0 : i64, tpu.core_type = #tpu.core_type<tc>, window_params = [{transform_indices = @transform_0, window_bounds = array<i64: 1, 8, 32>}, {transform_indices = @transform_1, window_bounds = array<i64: 1, 8, 32>}, {pipeline_mode = #tpu.pipeline_mode<synchronous>, transform_indices = @transform_2, window_bounds = array<i64: 32, 32>}, {pipeline_mode = #tpu.pipeline_mode<synchronous>, transform_indices = @transform_3, window_bounds = array<i64: 1, 32>}, {pipeline_mode = #tpu.pipeline_mode<synchronous>, transform_indices = @transform_4, window_bounds = array<i64: 32, 64>}, {pipeline_mode = #tpu.pipeline_mode<synchronous>, transform_indices = @transform_5, window_bounds = array<i64: 1, 64>}, {pipeline_mode = #tpu.pipeline_mode<synchronous>, transform_indices = @transform_6, window_bounds = array<i64: 32, 32>}, {pipeline_mode = #tpu.pipeline_mode<synchronous>, transform_indices = @transform_7, window_bounds = array<i64: 1, 32>}, {pipeline_mode = #tpu.pipeline_mode<synchronous>, transform_indices = @transform_8, window_bounds = array<i64: 1, 32>}, {pipeline_mode = #tpu.pipeline_mode<synchronous>, transform_indices = @transform_9, window_bounds = array<i64: 1, 32>}, {pipeline_mode = #tpu.pipeline_mode<synchronous>, transform_indices = @transform_10, window_bounds = array<i64: 32, 128>}, {pipeline_mode = #tpu.pipeline_mode<synchronous>, transform_indices = @transform_11, window_bounds = array<i64: 1, 128>}, {pipeline_mode = #tpu.pipeline_mode<synchronous>, transform_indices = @transform_12, window_bounds = array<i64: 128, 32>}, {pipeline_mode = #tpu.pipeline_mode<synchronous>, transform_indices = @transform_13, window_bounds = array<i64: 1, 32>}, {pipeline_mode = #tpu.pipeline_mode<synchronous>, transform_indices = @transform_14, window_bounds = array<i64: 1, 32>}, {pipeline_mode = #tpu.pipeline_mode<synchronous>, transform_indices = @transform_15, window_bounds = array<i64: 1, 32>}, {transform_indices = @transform_16, window_bounds = array<i64: 1, 8, 32>}]} {
    %c0 = arith.constant 0 : index
    %c0_0 = arith.constant 0 : index
    %c0_1 = arith.constant 0 : index
    %0 = vector.load %arg2[%c0, %c0_0, %c0_1] : memref<1x8x32xf32, #tpu.memory_space<vmem>>, vector<1x8x32xf32>
    %1 = vector.shape_cast %0 : vector<1x8x32xf32> to vector<8x32xf32>
    %c0_2 = arith.constant 0 : index
    %c0_3 = arith.constant 0 : index
    %c0_4 = arith.constant 0 : index
    %2 = vector.load %arg3[%c0_2, %c0_3, %c0_4] : memref<1x8x32xf32, #tpu.memory_space<vmem>>, vector<1x8x32xf32>
    %3 = vector.shape_cast %2 : vector<1x8x32xf32> to vector<8x32xf32>
    %4 = arith.truncf %1 : vector<8x32xf32> to vector<8x32xbf16>
    %c0_5 = arith.constant 0 : index
    %c0_6 = arith.constant 0 : index
    %5 = vector.load %arg4[%c0_5, %c0_6] : memref<32x32xbf16, #tpu.memory_space<vmem>>, vector<32x32xbf16>
    %cst = arith.constant dense<0.000000e+00> : vector<8x32xf32>
    %6 = tpu.matmul %4, %5, %cst {dimension_numbers = #tpu.dot_dimension_numbers<[1], [0], [0], [1], [0, 0, 1, 1], [], []>} : vector<8x32xbf16>, vector<32x32xbf16>, vector<8x32xf32> -> vector<8x32xf32>
    %c0_7 = arith.constant 0 : index
    %c0_8 = arith.constant 0 : index
    %7 = vector.load %arg5[%c0_7, %c0_8] : memref<1x32xf32, #tpu.memory_space<vmem>>, vector<1x32xf32>
    %8 = vector.broadcast %7 : vector<1x32xf32> to vector<8x32xf32>
    %9 = arith.addf %6, %8 : vector<8x32xf32>
    %10 = arith.truncf %3 : vector<8x32xf32> to vector<8x32xbf16>
    %c0_9 = arith.constant 0 : index
    %c0_10 = arith.constant 0 : index
    %11 = vector.load %arg6[%c0_9, %c0_10] : memref<32x64xbf16, #tpu.memory_space<vmem>>, vector<32x64xbf16>
    %cst_11 = arith.constant dense<0.000000e+00> : vector<8x64xf32>
    %12 = tpu.matmul %10, %11, %cst_11 {dimension_numbers = #tpu.dot_dimension_numbers<[1], [0], [0], [1], [0, 0, 1, 1], [], []>} : vector<8x32xbf16>, vector<32x64xbf16>, vector<8x64xf32> -> vector<8x64xf32>
    %c0_12 = arith.constant 0 : index
    %c0_13 = arith.constant 0 : index
    %13 = vector.load %arg7[%c0_12, %c0_13] : memref<1x64xf32, #tpu.memory_space<vmem>>, vector<1x64xf32>
    %14 = vector.broadcast %13 : vector<1x64xf32> to vector<8x64xf32>
    %15 = arith.addf %12, %14 : vector<8x64xf32>
    %16 = arith.truncf %9 : vector<8x32xf32> to vector<8x32xbf16>
    %17 = arith.truncf %15 : vector<8x64xf32> to vector<8x64xbf16>
    %18 = vector.extract_strided_slice %16 {offsets = [0, 0], sizes = [8, 8], strides = [1, 1]} : vector<8x32xbf16> to vector<8x8xbf16>
    %19 = vector.extract_strided_slice %16 {offsets = [0, 8], sizes = [8, 8], strides = [1, 1]} : vector<8x32xbf16> to vector<8x8xbf16>
    %20 = vector.extract_strided_slice %16 {offsets = [0, 16], sizes = [8, 8], strides = [1, 1]} : vector<8x32xbf16> to vector<8x8xbf16>
    %21 = vector.extract_strided_slice %16 {offsets = [0, 24], sizes = [8, 8], strides = [1, 1]} : vector<8x32xbf16> to vector<8x8xbf16>
    %22 = vector.shape_cast %18 : vector<8x8xbf16> to vector<1x8x8xbf16>
    %23 = vector.shape_cast %19 : vector<8x8xbf16> to vector<1x8x8xbf16>
    %24 = vector.shape_cast %20 : vector<8x8xbf16> to vector<1x8x8xbf16>
    %25 = vector.shape_cast %21 : vector<8x8xbf16> to vector<1x8x8xbf16>
    %26 = tpu.concatenate %22, %23, %24, %25 in 0 : vector<1x8x8xbf16>, vector<1x8x8xbf16>, vector<1x8x8xbf16>, vector<1x8x8xbf16> -> vector<4x8x8xbf16>
    %27 = vector.extract_strided_slice %17 {offsets = [0, 0], sizes = [8, 8], strides = [1, 1]} : vector<8x64xbf16> to vector<8x8xbf16>
    %28 = vector.extract_strided_slice %17 {offsets = [0, 8], sizes = [8, 8], strides = [1, 1]} : vector<8x64xbf16> to vector<8x8xbf16>
    %29 = vector.extract_strided_slice %17 {offsets = [0, 16], sizes = [8, 8], strides = [1, 1]} : vector<8x64xbf16> to vector<8x8xbf16>
    %30 = vector.extract_strided_slice %17 {offsets = [0, 24], sizes = [8, 8], strides = [1, 1]} : vector<8x64xbf16> to vector<8x8xbf16>
    %31 = vector.shape_cast %27 : vector<8x8xbf16> to vector<1x8x8xbf16>
    %32 = vector.shape_cast %28 : vector<8x8xbf16> to vector<1x8x8xbf16>
    %33 = vector.shape_cast %29 : vector<8x8xbf16> to vector<1x8x8xbf16>
    %34 = vector.shape_cast %30 : vector<8x8xbf16> to vector<1x8x8xbf16>
    %35 = tpu.concatenate %31, %32, %33, %34 in 0 : vector<1x8x8xbf16>, vector<1x8x8xbf16>, vector<1x8x8xbf16>, vector<1x8x8xbf16> -> vector<4x8x8xbf16>
    %36 = vector.extract_strided_slice %17 {offsets = [0, 32], sizes = [8, 8], strides = [1, 1]} : vector<8x64xbf16> to vector<8x8xbf16>
    %37 = vector.extract_strided_slice %17 {offsets = [0, 40], sizes = [8, 8], strides = [1, 1]} : vector<8x64xbf16> to vector<8x8xbf16>
    %38 = vector.extract_strided_slice %17 {offsets = [0, 48], sizes = [8, 8], strides = [1, 1]} : vector<8x64xbf16> to vector<8x8xbf16>
    %39 = vector.extract_strided_slice %17 {offsets = [0, 56], sizes = [8, 8], strides = [1, 1]} : vector<8x64xbf16> to vector<8x8xbf16>
    %40 = vector.shape_cast %36 : vector<8x8xbf16> to vector<1x8x8xbf16>
    %41 = vector.shape_cast %37 : vector<8x8xbf16> to vector<1x8x8xbf16>
    %42 = vector.shape_cast %38 : vector<8x8xbf16> to vector<1x8x8xbf16>
    %43 = vector.shape_cast %39 : vector<8x8xbf16> to vector<1x8x8xbf16>
    %44 = tpu.concatenate %40, %41, %42, %43 in 0 : vector<1x8x8xbf16>, vector<1x8x8xbf16>, vector<1x8x8xbf16>, vector<1x8x8xbf16> -> vector<4x8x8xbf16>
    "tpu.trace_start"() <{level = 10 : i32, message = "hqd,hkd->hqk"}> : () -> ()
    %cst_14 = arith.constant dense<0.000000e+00> : vector<4x8x8xf32>
    %45 = tpu.matmul %26, %35, %cst_14 {dimension_numbers = #tpu.dot_dimension_numbers<[2], [2], [1], [1], [0, 0, 0, 1, 1, 1], [0], [0]>} : vector<4x8x8xbf16>, vector<4x8x8xbf16>, vector<4x8x8xf32> -> vector<4x8x8xf32>
    "tpu.trace_stop"() : () -> ()
    %cst_15 = arith.constant dense<0xFF800000> : vector<4x8xf32>
    %46 = vector.multi_reduction <maximumf>, %45, %cst_15 [2] : vector<4x8x8xf32> to vector<4x8xf32>
    %47 = vector.shape_cast %46 : vector<4x8xf32> to vector<4x8x1xf32>
    %48 = vector.broadcast %47 : vector<4x8x1xf32> to vector<4x8x8xf32>
    %49 = arith.subf %45, %48 : vector<4x8x8xf32>
    %50 = math.exp %49 : vector<4x8x8xf32>
    %cst_16 = arith.constant dense<0.000000e+00> : vector<4x8xf32>
    %51 = vector.multi_reduction <add>, %50, %cst_16 [2] : vector<4x8x8xf32> to vector<4x8xf32>
    %52 = vector.shape_cast %51 : vector<4x8xf32> to vector<4x8x1xf32>
    %53 = tpu.reciprocal %52 {approx = true} : vector<4x8x1xf32> -> vector<4x8x1xf32>
    %54 = vector.broadcast %53 : vector<4x8x1xf32> to vector<4x8x8xf32>
    %55 = arith.mulf %50, %54 : vector<4x8x8xf32>
    %56 = arith.truncf %55 : vector<4x8x8xf32> to vector<4x8x8xbf16>
    "tpu.trace_start"() <{level = 10 : i32, message = "hqk,hkd->hqd"}> : () -> ()
    %cst_17 = arith.constant dense<0.000000e+00> : vector<4x8x8xf32>
    %57 = tpu.matmul %56, %44, %cst_17 {dimension_numbers = #tpu.dot_dimension_numbers<[2], [1], [1], [2], [0, 0, 0, 1, 1, 2], [0], [0]>} : vector<4x8x8xbf16>, vector<4x8x8xbf16>, vector<4x8x8xf32> -> vector<4x8x8xf32>
    "tpu.trace_stop"() : () -> ()
    %58 = vector.extract_strided_slice %57 {offsets = [0, 0, 0], sizes = [1, 8, 8], strides = [1, 1, 1]} : vector<4x8x8xf32> to vector<1x8x8xf32>
    %59 = vector.shape_cast %58 : vector<1x8x8xf32> to vector<8x8xf32>
    %60 = vector.extract_strided_slice %57 {offsets = [1, 0, 0], sizes = [1, 8, 8], strides = [1, 1, 1]} : vector<4x8x8xf32> to vector<1x8x8xf32>
    %61 = vector.shape_cast %60 : vector<1x8x8xf32> to vector<8x8xf32>
    %62 = vector.extract_strided_slice %57 {offsets = [2, 0, 0], sizes = [1, 8, 8], strides = [1, 1, 1]} : vector<4x8x8xf32> to vector<1x8x8xf32>
    %63 = vector.shape_cast %62 : vector<1x8x8xf32> to vector<8x8xf32>
    %64 = vector.extract_strided_slice %57 {offsets = [3, 0, 0], sizes = [1, 8, 8], strides = [1, 1, 1]} : vector<4x8x8xf32> to vector<1x8x8xf32>
    %65 = vector.shape_cast %64 : vector<1x8x8xf32> to vector<8x8xf32>
    %66 = tpu.concatenate %59, %61, %63, %65 in 1 : vector<8x8xf32>, vector<8x8xf32>, vector<8x8xf32>, vector<8x8xf32> -> vector<8x32xf32>
    %67 = arith.truncf %66 : vector<8x32xf32> to vector<8x32xbf16>
    %c0_18 = arith.constant 0 : index
    %c0_19 = arith.constant 0 : index
    %68 = vector.load %arg8[%c0_18, %c0_19] : memref<32x32xbf16, #tpu.memory_space<vmem>>, vector<32x32xbf16>
    %cst_20 = arith.constant dense<0.000000e+00> : vector<8x32xf32>
    %69 = tpu.matmul %67, %68, %cst_20 {dimension_numbers = #tpu.dot_dimension_numbers<[1], [0], [0], [1], [0, 0, 1, 1], [], []>} : vector<8x32xbf16>, vector<32x32xbf16>, vector<8x32xf32> -> vector<8x32xf32>
    %c0_21 = arith.constant 0 : index
    %c0_22 = arith.constant 0 : index
    %70 = vector.load %arg9[%c0_21, %c0_22] : memref<1x32xf32, #tpu.memory_space<vmem>>, vector<1x32xf32>
    %71 = vector.broadcast %70 : vector<1x32xf32> to vector<8x32xf32>
    %72 = arith.addf %69, %71 : vector<8x32xf32>
    %73 = arith.addf %1, %72 : vector<8x32xf32>
    %c0_23 = arith.constant 0 : index
    %c0_24 = arith.constant 0 : index
    %74 = vector.load %arg10[%c0_23, %c0_24] : memref<1x32xf32, #tpu.memory_space<vmem>>, vector<1x32xf32>
    %c0_25 = arith.constant 0 : index
    %c0_26 = arith.constant 0 : index
    %75 = vector.load %arg11[%c0_25, %c0_26] : memref<1x32xf32, #tpu.memory_space<vmem>>, vector<1x32xf32>
    %cst_27 = arith.constant dense<0.000000e+00> : vector<8xf32>
    %76 = vector.multi_reduction <add>, %73, %cst_27 [1] : vector<8x32xf32> to vector<8xf32>
    %77 = vector.shape_cast %76 : vector<8xf32> to vector<8x1xf32>
    %cst_28 = arith.constant 3.200000e+01 : f32
    %78 = vector.broadcast %cst_28 : f32 to vector<8x1xf32>
    %79 = arith.divf %77, %78 : vector<8x1xf32>
    %80 = vector.broadcast %79 : vector<8x1xf32> to vector<8x32xf32>
    %81 = arith.subf %73, %80 : vector<8x32xf32>
    %82 = arith.mulf %81, %81 : vector<8x32xf32>
    %cst_29 = arith.constant dense<0.000000e+00> : vector<8xf32>
    %83 = vector.multi_reduction <add>, %82, %cst_29 [1] : vector<8x32xf32> to vector<8xf32>
    %84 = vector.shape_cast %83 : vector<8xf32> to vector<8x1xf32>
    %cst_30 = arith.constant 3.200000e+01 : f32
    %85 = vector.broadcast %cst_30 : f32 to vector<8x1xf32>
    %86 = arith.divf %84, %85 : vector<8x1xf32>
    %cst_31 = arith.constant 9.99999974E-6 : f32
    %87 = vector.broadcast %cst_31 : f32 to vector<8x1xf32>
    %88 = arith.addf %86, %87 : vector<8x1xf32>
    %89 = math.rsqrt %88 : vector<8x1xf32>
    %90 = vector.broadcast %89 : vector<8x1xf32> to vector<8x32xf32>
    %91 = arith.mulf %81, %90 : vector<8x32xf32>
    %92 = vector.broadcast %74 : vector<1x32xf32> to vector<8x32xf32>
    %93 = arith.mulf %91, %92 : vector<8x32xf32>
    %94 = vector.broadcast %75 : vector<1x32xf32> to vector<8x32xf32>
    %95 = arith.addf %93, %94 : vector<8x32xf32>
    %96 = arith.truncf %95 : vector<8x32xf32> to vector<8x32xbf16>
    %c0_32 = arith.constant 0 : index
    %c0_33 = arith.constant 0 : index
    %97 = vector.load %arg12[%c0_32, %c0_33] : memref<32x128xbf16, #tpu.memory_space<vmem>>, vector<32x128xbf16>
    %cst_34 = arith.constant dense<0.000000e+00> : vector<8x128xf32>
    %98 = tpu.matmul %96, %97, %cst_34 {dimension_numbers = #tpu.dot_dimension_numbers<[1], [0], [0], [1], [0, 0, 1, 1], [], []>} : vector<8x32xbf16>, vector<32x128xbf16>, vector<8x128xf32> -> vector<8x128xf32>
    %c0_35 = arith.constant 0 : index
    %c0_36 = arith.constant 0 : index
    %99 = vector.load %arg13[%c0_35, %c0_36] : memref<1x128xf32, #tpu.memory_space<vmem>>, vector<1x128xf32>
    %100 = vector.broadcast %99 : vector<1x128xf32> to vector<8x128xf32>
    %101 = arith.addf %98, %100 : vector<8x128xf32>
    %cst_37 = arith.constant 5.000000e-01 : f32
    %102 = vector.broadcast %cst_37 : f32 to vector<8x128xf32>
    %103 = arith.mulf %102, %101 : vector<8x128xf32>
    %cst_38 = arith.constant 0.707106769 : f32
    %104 = vector.broadcast %cst_38 : f32 to vector<8x128xf32>
    %105 = arith.mulf %101, %104 : vector<8x128xf32>
    %cst_39 = arith.constant 0.000000e+00 : f32
    %106 = vector.broadcast %cst_39 : f32 to vector<8x128xf32>
    %107 = arith.cmpf oge, %105, %106 : vector<8x128xf32>
    %cst_40 = arith.constant 1.000000e+00 : f32
    %cst_41 = arith.constant -1.000000e+00 : f32
    %108 = vector.broadcast %cst_40 : f32 to vector<8x128xf32>
    %109 = vector.broadcast %cst_41 : f32 to vector<8x128xf32>
    %110 = arith.select %107, %108, %109 : vector<8x128xi1>, vector<8x128xf32>
    %111 = math.absf %105 : vector<8x128xf32>
    %cst_42 = arith.constant 0.327591091 : f32
    %112 = vector.broadcast %cst_42 : f32 to vector<8x128xf32>
    %113 = arith.mulf %112, %111 : vector<8x128xf32>
    %cst_43 = arith.constant 1.000000e+00 : f32
    %114 = vector.broadcast %cst_43 : f32 to vector<8x128xf32>
    %115 = arith.addf %114, %113 : vector<8x128xf32>
    %cst_44 = arith.constant 1.000000e+00 : f32
    %116 = vector.broadcast %cst_44 : f32 to vector<8x128xf32>
    %117 = arith.divf %116, %115 : vector<8x128xf32>
    %cst_45 = arith.constant 1.06140542 : f32
    %118 = vector.broadcast %cst_45 : f32 to vector<8x128xf32>
    %119 = arith.mulf %118, %117 : vector<8x128xf32>
    %cst_46 = arith.constant -1.45315206 : f32
    %120 = vector.broadcast %cst_46 : f32 to vector<8x128xf32>
    %121 = arith.addf %119, %120 : vector<8x128xf32>
    %122 = arith.mulf %121, %117 : vector<8x128xf32>
    %cst_47 = arith.constant 1.42141378 : f32
    %123 = vector.broadcast %cst_47 : f32 to vector<8x128xf32>
    %124 = arith.addf %122, %123 : vector<8x128xf32>
    %125 = arith.mulf %124, %117 : vector<8x128xf32>
    %cst_48 = arith.constant -0.284496725 : f32
    %126 = vector.broadcast %cst_48 : f32 to vector<8x128xf32>
    %127 = arith.addf %125, %126 : vector<8x128xf32>
    %128 = arith.mulf %127, %117 : vector<8x128xf32>
    %cst_49 = arith.constant 0.254829586 : f32
    %129 = vector.broadcast %cst_49 : f32 to vector<8x128xf32>
    %130 = arith.addf %128, %129 : vector<8x128xf32>
    %131 = arith.mulf %130, %117 : vector<8x128xf32>
    %cst_50 = arith.constant 0.000000e+00 : f32
    %132 = vector.broadcast %cst_50 : f32 to vector<8x128xf32>
    %133 = arith.subf %132, %111 : vector<8x128xf32>
    %134 = arith.mulf %133, %111 : vector<8x128xf32>
    %135 = math.exp %134 : vector<8x128xf32>
    %136 = arith.mulf %131, %135 : vector<8x128xf32>
    %cst_51 = arith.constant 1.000000e+00 : f32
    %137 = vector.broadcast %cst_51 : f32 to vector<8x128xf32>
    %138 = arith.subf %137, %136 : vector<8x128xf32>
    %139 = arith.mulf %110, %138 : vector<8x128xf32>
    %cst_52 = arith.constant 1.000000e+00 : f32
    %140 = vector.broadcast %cst_52 : f32 to vector<8x128xf32>
    %141 = arith.addf %140, %139 : vector<8x128xf32>
    %142 = arith.mulf %103, %141 : vector<8x128xf32>
    %143 = arith.truncf %142 : vector<8x128xf32> to vector<8x128xbf16>
    %c0_53 = arith.constant 0 : index
    %c0_54 = arith.constant 0 : index
    %144 = vector.load %arg14[%c0_53, %c0_54] : memref<128x32xbf16, #tpu.memory_space<vmem>>, vector<128x32xbf16>
    %cst_55 = arith.constant dense<0.000000e+00> : vector<8x32xf32>
    %145 = tpu.matmul %143, %144, %cst_55 {dimension_numbers = #tpu.dot_dimension_numbers<[1], [0], [0], [1], [0, 0, 1, 1], [], []>} : vector<8x128xbf16>, vector<128x32xbf16>, vector<8x32xf32> -> vector<8x32xf32>
    %c0_56 = arith.constant 0 : index
    %c0_57 = arith.constant 0 : index
    %146 = vector.load %arg15[%c0_56, %c0_57] : memref<1x32xf32, #tpu.memory_space<vmem>>, vector<1x32xf32>
    %147 = vector.broadcast %146 : vector<1x32xf32> to vector<8x32xf32>
    %148 = arith.addf %145, %147 : vector<8x32xf32>
    %149 = arith.addf %95, %148 : vector<8x32xf32>
    %c0_58 = arith.constant 0 : index
    %c0_59 = arith.constant 0 : index
    %150 = vector.load %arg16[%c0_58, %c0_59] : memref<1x32xf32, #tpu.memory_space<vmem>>, vector<1x32xf32>
    %c0_60 = arith.constant 0 : index
    %c0_61 = arith.constant 0 : index
    %151 = vector.load %arg17[%c0_60, %c0_61] : memref<1x32xf32, #tpu.memory_space<vmem>>, vector<1x32xf32>
    %cst_62 = arith.constant dense<0.000000e+00> : vector<8xf32>
    %152 = vector.multi_reduction <add>, %149, %cst_62 [1] : vector<8x32xf32> to vector<8xf32>
    %153 = vector.shape_cast %152 : vector<8xf32> to vector<8x1xf32>
    %cst_63 = arith.constant 3.200000e+01 : f32
    %154 = vector.broadcast %cst_63 : f32 to vector<8x1xf32>
    %155 = arith.divf %153, %154 : vector<8x1xf32>
    %156 = vector.broadcast %155 : vector<8x1xf32> to vector<8x32xf32>
    %157 = arith.subf %149, %156 : vector<8x32xf32>
    %158 = arith.mulf %157, %157 : vector<8x32xf32>
    %cst_64 = arith.constant dense<0.000000e+00> : vector<8xf32>
    %159 = vector.multi_reduction <add>, %158, %cst_64 [1] : vector<8x32xf32> to vector<8xf32>
    %160 = vector.shape_cast %159 : vector<8xf32> to vector<8x1xf32>
    %cst_65 = arith.constant 3.200000e+01 : f32
    %161 = vector.broadcast %cst_65 : f32 to vector<8x1xf32>
    %162 = arith.divf %160, %161 : vector<8x1xf32>
    %cst_66 = arith.constant 9.99999974E-6 : f32
    %163 = vector.broadcast %cst_66 : f32 to vector<8x1xf32>
    %164 = arith.addf %162, %163 : vector<8x1xf32>
    %165 = math.rsqrt %164 : vector<8x1xf32>
    %166 = vector.broadcast %165 : vector<8x1xf32> to vector<8x32xf32>
    %167 = arith.mulf %157, %166 : vector<8x32xf32>
    %168 = vector.broadcast %150 : vector<1x32xf32> to vector<8x32xf32>
    %169 = arith.mulf %167, %168 : vector<8x32xf32>
    %170 = vector.broadcast %151 : vector<1x32xf32> to vector<8x32xf32>
    %171 = arith.addf %169, %170 : vector<8x32xf32>
    %c0_67 = arith.constant 0 : index
    %c0_68 = arith.constant 0 : index
    %c0_69 = arith.constant 0 : index
    %172 = vector.load %arg18[%c0_67, %c0_68, %c0_69] : memref<1x8x32xf32, #tpu.memory_space<vmem>>, vector<1x8x32xf32>
    %173 = vector.shape_cast %172 : vector<1x8x32xf32> to vector<8x32xf32>
    %174 = vector.shape_cast %171 : vector<8x32xf32> to vector<1x8x32xf32>
    tpu.vector_store %arg18[%c0_67, %c0_68, %c0_69], %174 {strides = array<i32>} : memref<1x8x32xf32, #tpu.memory_space<vmem>>, vector<1x8x32xf32>,
    return
  }
  func.func @transform_0(%arg0: i32, %arg1: i32) -> (i32, i32, i32) {
    %c0_i32 = arith.constant 0 : i32
    %c0_i32_0 = arith.constant 0 : i32
    return %arg0, %arg1, %c0_i32 : i32, i32, i32
  }
  func.func @transform_1(%arg0: i32, %arg1: i32) -> (i32, i32, i32) {
    %c0_i32 = arith.constant 0 : i32
    %c0_i32_0 = arith.constant 0 : i32
    %c0_i32_1 = arith.constant 0 : i32
    return %arg0, %c0_i32, %c0_i32_0 : i32, i32, i32
  }
  func.func @transform_2(%arg0: i32, %arg1: i32) -> (i32, i32) {
    %c0_i32 = arith.constant 0 : i32
    %c0_i32_0 = arith.constant 0 : i32
    %c0_i32_1 = arith.constant 0 : i32
    return %c0_i32, %c0_i32_0 : i32, i32
  }
  func.func @transform_3(%arg0: i32, %arg1: i32) -> (i32, i32) {
    %c0_i32 = arith.constant 0 : i32
    %c0_i32_0 = arith.constant 0 : i32
    %c0_i32_1 = arith.constant 0 : i32
    return %c0_i32, %c0_i32_0 : i32, i32
  }
  func.func @transform_4(%arg0: i32, %arg1: i32) -> (i32, i32) {
    %c0_i32 = arith.constant 0 : i32
    %c0_i32_0 = arith.constant 0 : i32
    %c0_i32_1 = arith.constant 0 : i32
    return %c0_i32, %c0_i32_0 : i32, i32
  }
  func.func @transform_5(%arg0: i32, %arg1: i32) -> (i32, i32) {
    %c0_i32 = arith.constant 0 : i32
    %c0_i32_0 = arith.constant 0 : i32
    %c0_i32_1 = arith.constant 0 : i32
    return %c0_i32, %c0_i32_0 : i32, i32
  }
  func.func @transform_6(%arg0: i32, %arg1: i32) -> (i32, i32) {
    %c0_i32 = arith.constant 0 : i32
    %c0_i32_0 = arith.constant 0 : i32
    %c0_i32_1 = arith.constant 0 : i32
    return %c0_i32, %c0_i32_0 : i32, i32
  }
  func.func @transform_7(%arg0: i32, %arg1: i32) -> (i32, i32) {
    %c0_i32 = arith.constant 0 : i32
    %c0_i32_0 = arith.constant 0 : i32
    %c0_i32_1 = arith.constant 0 : i32
    return %c0_i32, %c0_i32_0 : i32, i32
  }
  func.func @transform_8(%arg0: i32, %arg1: i32) -> (i32, i32) {
    %c0_i32 = arith.constant 0 : i32
    %c0_i32_0 = arith.constant 0 : i32
    %c0_i32_1 = arith.constant 0 : i32
    return %c0_i32, %c0_i32_0 : i32, i32
  }
  func.func @transform_9(%arg0: i32, %arg1: i32) -> (i32, i32) {
    %c0_i32 = arith.constant 0 : i32
    %c0_i32_0 = arith.constant 0 : i32
    %c0_i32_1 = arith.constant 0 : i32
    return %c0_i32, %c0_i32_0 : i32, i32
  }
  func.func @transform_10(%arg0: i32, %arg1: i32) -> (i32, i32) {
    %c0_i32 = arith.constant 0 : i32
    %c0_i32_0 = arith.constant 0 : i32
    %c0_i32_1 = arith.constant 0 : i32
    return %c0_i32, %c0_i32_0 : i32, i32
  }
  func.func @transform_11(%arg0: i32, %arg1: i32) -> (i32, i32) {
    %c0_i32 = arith.constant 0 : i32
    %c0_i32_0 = arith.constant 0 : i32
    %c0_i32_1 = arith.constant 0 : i32
    return %c0_i32, %c0_i32_0 : i32, i32
  }
  func.func @transform_12(%arg0: i32, %arg1: i32) -> (i32, i32) {
    %c0_i32 = arith.constant 0 : i32
    %c0_i32_0 = arith.constant 0 : i32
    %c0_i32_1 = arith.constant 0 : i32
    return %c0_i32, %c0_i32_0 : i32, i32
  }
  func.func @transform_13(%arg0: i32, %arg1: i32) -> (i32, i32) {
    %c0_i32 = arith.constant 0 : i32
    %c0_i32_0 = arith.constant 0 : i32
    %c0_i32_1 = arith.constant 0 : i32
    return %c0_i32, %c0_i32_0 : i32, i32
  }
  func.func @transform_14(%arg0: i32, %arg1: i32) -> (i32, i32) {
    %c0_i32 = arith.constant 0 : i32
    %c0_i32_0 = arith.constant 0 : i32
    %c0_i32_1 = arith.constant 0 : i32
    return %c0_i32, %c0_i32_0 : i32, i32
  }
  func.func @transform_15(%arg0: i32, %arg1: i32) -> (i32, i32) {
    %c0_i32 = arith.constant 0 : i32
    %c0_i32_0 = arith.constant 0 : i32
    %c0_i32_1 = arith.constant 0 : i32
    return %c0_i32, %c0_i32_0 : i32, i32
  }
  func.func @transform_16(%arg0: i32, %arg1: i32) -> (i32, i32, i32) {
    %c0_i32 = arith.constant 0 : i32
    %c0_i32_0 = arith.constant 0 : i32
    return %arg0, %arg1, %c0_i32 : i32, i32, i32
  }
}

</mosaic_0001>

<bundles_post_ra>
// kernel: tpu_custom_call.1
= control target key start
LH: loop header
LB: loop body
LE: loop exit
PB: predicated region body
PF: predicated region fallthrough
CT: control target
= control target key end

     0   :  { %s2642_s0 = inlined_call_operand.vmem [shape: f32[2,8,32], index: 0, kind: input, shape index: {}]   ;;  %s2643_s1 = inlined_call_operand.vmem [shape: f32[2,8,32], index: 1, kind: input, shape index: {}]   ;;  %s2644_s2 = inlined_call_operand.vmem [shape: bf16[32,32], index: 2, kind: input, shape index: {}]   ;;  %s2645_s3 = inlined_call_operand.vmem [shape: f32[1,32], index: 3, kind: input, shape index: {}]   ;;  %s2646_s4 = inlined_call_operand.vmem [shape: bf16[32,64], index: 4, kind: input, shape index: {}]   ;;  %s2647_s5 = inlined_call_operand.vmem [shape: f32[1,64], index: 5, kind: input, shape index: {}]   ;;  %s2648_s6 = inlined_call_operand.vmem [shape: bf16[32,32], index: 6, kind: input, shape index: {}]   ;;  %s2649_s7 = inlined_call_operand.hbm [shape: f32[1,32], index: 7, kind: input, shape index: {}]   ;;  %s2650_s8 = inlined_call_operand.hbm [shape: f32[1,32], index: 8, kind: input, shape index: {}]   ;;  %s2651_s9 = inlined_call_operand.hbm [shape: f32[1,32], index: 9, kind: input, shape index: {}]   ;;  %s2652_s10 = inlined_call_operand.vmem [shape: bf16[32,128], index: 10, kind: input, shape index: {}]   ;;  %s2653_s11 = inlined_call_operand.vmem [shape: f32[1,128], index: 11, kind: input, shape index: {}]   ;;  %s2654_s12 = inlined_call_operand.vmem [shape: bf16[128,32], index: 12, kind: input, shape index: {}]   ;;  %s2655_s13 = inlined_call_operand.vmem [shape: f32[1,32], index: 13, kind: input, shape index: {}]   ;;  %s2656_s14 = inlined_call_operand.vmem [shape: f32[1,32], index: 14, kind: input, shape index: {}]   ;;  %s2657_s15 = inlined_call_operand.vmem [shape: f32[1,32], index: 15, kind: input, shape index: {}]   ;;  %s2658_s16 = inlined_call_operand.hbm [shape: f32[2,8,32], index: 16, kind: output, shape index: {}]  }
   0x1   :  { %2671 = sst [smem:[#allocation19_spill]] %s2642_s0 }
   0x2   :  { %2672 = sst [smem:[#allocation20_spill]] %s2650_s8 }
   0x3   :  { %2673 = sst [smem:[#allocation21_spill]] %s2656_s14 }
   0x4   :  { %2674 = sst [smem:[#allocation22_spill]] %s2657_s15 }
   0x5   :  { %2675 = sst [smem:[#allocation23_spill]] %s2658_s16 }
   0x6   :  { %21 = vsyncpa [#allocation3], 0 }
   0x7   :  { %22 = vsyncpa [#allocation6], 0 }
   0x8   :  { %23 = vsyncpa [#allocation4], 0 }
   0x9   :  { %25 = vsyncpa [#allocation4 + $0x1], 0  ;;  %s2257_s21 = smov 0   ;;  %s2259_s22 = smov 0  }
   0xa   :  { %s2261_s23 = smov 0   ;;  %s2263_s24 = smov 0  }
   0xb   :  { %s2265_s25 = smov 0   ;;  %s2267_s26 = smov 0  }
   0xc LB: > { %2676 = sst [smem:[#allocation12_spill]] %s2136_s21  ;;  %s1658_s27 = sadd.s32 4294967295, %s2156_s26   ;;  %s2156_s26 = sphi %s2267_s26, %s31_s26   ;;  %s2152_s25 = sphi %s2265_s25, %s2704_s25   ;;  %s2148_s24 = sphi %s2263_s24, %s2703_s24   ;;  %s2144_s23 = sphi %s2261_s23, %s2702_s23   ;;  %s2140_s22 = sphi %s2259_s22, %s2706_s22   ;;  %s2136_s21 = sphi %s2257_s21, %s2705_s21  }
   0xd   : > { %2677 = sst [smem:[#allocation13_spill]] %s2144_s23  ;;  %s1659_s28 = sadd.s32 4294967294, %s2156_s26  }
   0xe   : > { %2678 = sst [smem:[#allocation14_spill]] %s2152_s25  ;;  %s43_s29 = sadd.s32 1, %s2152_s25 }
   0xf   : > { %2679 = sst [smem:[#allocation15_spill]] %s2156_s26  ;;  %s400_s30 = sadd.s32 1, %s2144_s23 }
  0x10   : > { %p45_p0 = scmp.ge.s32.totalorder %s43_s29, 2  ;;  %p410_p1 = scmp.ne.s32.totalorder %s2144_s23, %s2140_s22 }
  0x11   : > { %p411_p2 = scmp.eq.s32.totalorder %s1658_s27, 1  ;;  %p416_p3 = scmp.ne.s32.totalorder %s2140_s22, %s2136_s21 }
  0x12   : > { %s2708_s29 = smov (%p45_p0, %s43_s29), 0  ;;  %p417_p5 = scmp.eq.s32.totalorder %s1659_s28, 1 }
  0x13   : > { %2680 = sst [smem:[#allocation16_spill]] %s2708_s29  ;;  %p2297_p4 = por %p411_p2, %p410_p1 }
  0x14   : > { %s395_s17 = ssub.s32 %s2152_s25, %s2708_s29  ;;  %p1660_p6 = scmp.ge.s32.totalorder %s2156_s26, 1 }
  0x15   : > { %s2681_s0 = scalar_select %p2297_p4, 1, 0 }
  0x16   : > { %p398_p7 = scmp.eq.s32.totalorder %s395_s17, 0  ;;  %p2304_p8 = por %p417_p5, %p416_p3 }
  0x17   : > { %p424_p9 = scmp.lt.s32.totalorder %s2156_s26, 3  ;;  %p2316_p11 = scmp.eq.s32.totalorder %s1658_s27, 0 }
  0x18   : > { %s2682_s18 = scalar_select %p2304_p8, 1, 0 }
  0x19   : > { %s2310_s19 = scalar_select %p398_p7, %s2144_s23, %s400_s30  }
  0x1a   : > { %2683 = sst [smem:[#allocation17_spill]] %s2682_s18  ;;  %p2312_p10 = pnand %p1660_p6, %p424_p9 }
  0x1b   : > { %2684 = sst [smem:[#allocation18_spill]] %s2310_s19  ;;  %s2158_s28 = smov [#allocation5]  }
  0x1c   : > { %s2685_s20 = scalar_select %p2312_p10, 1, 0 }
  0x1d   : > { %s2686_s21 = scalar_select %p2316_p11, 1, 0 }
  0x1e   : > { %p1864_p12 = pneg %p2312_p10  ;;  %s463_s17 = sshll.u32 %s2158_s28, 4  ;;  %s464_s17 = int_to_ptr.vmem [resolvable:$true] %s463_s17 }
  0x1f   : > { %s2159_s30 = smov [#allocation2]   ;;  %s2688_s8 = sld [smem:[#allocation20_spill]] }
  0x20   : > { %p2324_p13 = pnand %p2316_p11, %p1864_p12  ;;  %s452_s25 = sshll.u32 %s2159_s30, 4  ;;  %s2328_s25 = int_to_ptr.vmem [resolvable:$true] %s452_s25 }
  0x22   : > { %p2338_p1 = pneg %p2324_p13 }
  0x25   : > { %s1986_s23 = scalar_lea.hbm %s2688_s8, 16 }
  0x26   : > { %p1987_p0 = scmp.ne.s32.totalorder %s2688_s8, %s1986_s23  ;;  %p1993_p5 = scmp.lt.u32.totalorder %s1986_s23, %s2688_s8 }
  0x28   : > { %p1989_p2 = pnand %p2338_p1, %p1987_p0 }
  0x2a   : > { %p1990_p3 = pneg %p1989_p2 }
  0x2c   : > { %p1995_p6 = pnand %p1993_p5, %p1990_p3 }
  0x2e   : > { %1998 = shalt.err (!%p1995_p6)
}
  0x2f   : > { %s1999_s19 = scalar_lea.vmem %s464_s17, 16  ;;  %s2006_s26 = scalar_lea.vmem %s464_s17, 32 }
  0x30   : > { %p2000_p7 = scmp.ne.s32.totalorder %s464_s17, %s1999_s19  ;;  %p2007_p8 = scmp.lt.s32.totalorder %s464_s17, %s464_s17 }
  0x31   : > { %p2008_p4 = scmp.lt.s32.totalorder %s2006_s26, %s1999_s19 }
  0x32   : > { %p2002_p9 = pnand %p2000_p7, %p2338_p1 }
  0x33   : > { %p2009_p11 = por %p2008_p4, %p2007_p8 }
  0x34   : > { %p2003_p12 = pneg %p2002_p9 }
  0x36   : > { %p2010_p10 = pnand %p2009_p11, %p2003_p12 }
  0x38   : > { %2013 = shalt.err (!%p2010_p10)
}
  0x39   : > { %1870 = dma.hbm_to_vmem [thread:$0]  (!%p2324_p13), %s2688_s8, 16, %s464_s17, [#allocation6]  }
  0x3a   : > { %s2014_s30 = scalar_lea.hbm %s2649_s7, 16 }
  0x3b   : > { %p2015_p0 = scmp.ne.s32.totalorder %s2649_s7, %s2014_s30  ;;  %p2021_p8 = scmp.lt.u32.totalorder %s2014_s30, %s2649_s7 }
  0x3d   : > { %p2017_p2 = pnand %p2015_p0, %p2338_p1 }
  0x3f   : > { %p2018_p4 = pneg %p2017_p2 }
  0x41   : > { %p2023_p10 = pnand %p2021_p8, %p2018_p4 }
  0x43   : > { %2026 = shalt.err (!%p2023_p10)
}
  0x44   : > { %s2027_s17 = scalar_lea.vmem %s2328_s25, 16  ;;  %s2034_s14 = scalar_lea.vmem %s2328_s25, 32 }
  0x45   : > { %p2028_p11 = scmp.ne.s32.totalorder %s2328_s25, %s2027_s17  ;;  %p2035_p6 = scmp.lt.s32.totalorder %s2328_s25, %s2328_s25 }
  0x46   : > { %p2036_p7 = scmp.lt.s32.totalorder %s2034_s14, %s2027_s17 }
  0x47   : > { %p2030_p3 = pnand %p2028_p11, %p2338_p1 }
  0x48   : > { %p2037_p9 = por %p2036_p7, %p2035_p6 }
  0x49   : > { %p2031_p5 = pneg %p2030_p3 }
  0x4b   : > { %p2038_p12 = pnand %p2037_p9, %p2031_p5 }
  0x4d   : > { %2041 = shalt.err (!%p2038_p12)
}
  0x4e   : > { %1867 = dma.hbm_to_vmem [thread:$0]  (!%p2324_p13), %s2649_s7, 16, %s2328_s25, [#allocation3]  }
  0x4f   : > { %s2160_s27 = smov [#allocation7]   ;;  %s2042_s19 = scalar_lea.hbm %s2651_s9, 16 }
  0x50   : > { %s474_s16 = sshll.u32 %s2160_s27, 4  ;;  %p2043_p0 = scmp.ne.s32.totalorder %s2651_s9, %s2042_s19  ;;  %s475_s16 = int_to_ptr.vmem [resolvable:$true] %s474_s16 }
  0x51   : > { %p2049_p8 = scmp.lt.u32.totalorder %s2042_s19, %s2651_s9 }
  0x52   : > { %p2045_p2 = pnand %p2043_p0, %p2338_p1 }
  0x54   : > { %p2046_p4 = pneg %p2045_p2 }
  0x56   : > { %p2051_p10 = pnand %p2049_p8, %p2046_p4 }
  0x58   : > { %2054 = shalt.err (!%p2051_p10)
}
  0x59   : > { %s2055_s25 = scalar_lea.vmem %s475_s16, 16  ;;  %s2062_s15 = scalar_lea.vmem %s475_s16, 32 }
  0x5a   : > { %p2056_p11 = scmp.ne.s32.totalorder %s475_s16, %s2055_s25  ;;  %p2063_p6 = scmp.lt.s32.totalorder %s475_s16, %s475_s16 }
  0x5b   : > { %p2064_p7 = scmp.lt.s32.totalorder %s2062_s15, %s2055_s25 }
  0x5c   : > { %p2058_p3 = pnand %p2056_p11, %p2338_p1 }
  0x5d   : > { %p2065_p9 = por %p2064_p7, %p2063_p6 }
  0x5e   : > { %p2059_p5 = pneg %p2058_p3 }
  0x60   : > { %p2066_p12 = pnand %p2065_p9, %p2059_p5 }
  0x62   : > { %2069 = shalt.err (!%p2066_p12)
}
  0x63   : > { %1873 = dma.hbm_to_vmem [thread:$0]  (!%p2324_p13), %s2651_s9, 16, %s475_s16, [#allocation6]  }
  0x64   : > { %p2690_p0 = scmp.ne.s32.totalorder %s2685_s20, 0 }
  0x65   : > { %p2691_p2 = scmp.ne.s32.totalorder (!%p2690_p0), %s2686_s21, 0 }
  0x66   : > { %522 = sbr.rel (%p2690_p0) target bundleno = 2673 (0xa71), region = 84 }
  0x6d   : > { %2123 = dma.done.wait (%p2691_p2), [#allocation3], 16  }
  0x6e   : > { %2125 = vsyncadd (%p2691_p2), [#allocation3], 4294967280 }
  0x6f   : > { %2127 = dma.done.wait (%p2691_p2), [#allocation6], 32  }
  0x70   : > { %2129 = vsyncadd (%p2691_p2), [#allocation6], 4294967264  ;;  %p586_p1 = scmp.lt.s32.totalorder %s2148_s24, 1  ;;  %v2161_v0 = vmov 0.0   ;;  %vm2162_vm0 = vmmov 0   ;;  %s2692_s28 = sld [smem:[#allocation19_spill]] }
  0x71   : > { %1750 = vmatprep.subr.bf16.mxu1 %v2161_v0  ;;  %1754 = vmatprep.mubr.msk.bf16.mxu1 %vm2162_vm0, %v2161_v0  ;;  %v1946_v1 = vld [vmem:[%s2644_s2] sm:$0xff]   ;;  %v1947_v2 = vld [vmem:[%s2644_s2 + $0x8] sm:$0xff]   ;;  %vm624_vm1 = vcmask 261120   ;;  %s2163_s21 = smov 120   ;;  %vm751_vm2 = vcmask 64512   ;;  %s2164_s23 = smov 104  }
  0x72   : > { %s587_s8 = scalar_select %p586_p1, %s2148_s24, 1  ;;  %1778 = vmatprep.subr.bf16.mxu0 %v2161_v0  ;;  %1780 = vmatprep.mubr.msk.bf16.mxu0 %vm2162_vm0, %v2161_v0  ;;  %v1948_v4 = vld [vmem:[%s2646_s4] sm:$0xff]   ;;  %v1949_v6 = vld [vmem:[%s2646_s4 + $0x8] sm:$0xff]   ;;  %vm989_vm3 = vcmask 1043456   ;;  %vm1190_vm4 = vcmask 130048   ;;  %vm1192_vm5 = vcmask 195584  }
  0x73   : > { %1751 = vmatpush3.bf16.msra.mxu1 %v1946_v1  ;;  %v1672_v9 = vld [vmem:[%s2645_s3] ss:$0 sm:$0xff]  ;;  %s2165_s30 = smov 112   ;;  %s2166_s19 = smov 96  }
  0x74   : > { %s1670_s29 = sshll.u32 %s587_s8, 3  ;;  %1752 = vmatprep.subr.bf16.mxu1 %v2161_v0  ;;  %v1676_v16 = vld [vmem:[%s2647_s5] ss:$0 sm:$0xff]  ;;  %s2167_s15 = smov 8  }
  0x75   : > { %s596_s18 = scalar_lea.vmem %s2643_s1, %s1670_s29  ;;  %s2169_s27 = smov 24  }
  0x76   : > { %s592_s16 = scalar_lea.vmem %s2692_s28, %s1670_s29  ;;  %v599_v7 = vld [vmem:[%s596_s18] sm:$0xff]  ;;  %s2168_s18 = smov 16  }
  0x77   : > { %v2423_v3 = vld [vmem:[%s592_s16] sm:$0xff]  ;;  %1753 = vmatpush3.bf16.msra.mxu1 %v1947_v2  ;;  %v668_v8 = vpack.c.bf16 %v599_v7, %v599_v7  ;;  %s2693_s25 = sld [smem:[#allocation21_spill]]  ;;  %s1710_s8 = sshll.u32 %s2148_s24, 7 }
  0x78   : > { %v600_v5 = vpack.c.bf16 %v2423_v3, %v2423_v3  ;;  %1758 = vmatprep.subr.bf16.mxu1 %v2161_v0  ;;  %s2695_s16 = sld [smem:[#allocation23_spill]]  ;;  %p2696_p4 = scmp.ne.s32.totalorder %s2681_s0, 0 }
  0x79   : > { %s2171_s24 = smov [#allocation8]  }
  0x7a   : > { %1755 = vmatmul.mubr.msk.bf16.vlgmr.msra.gmra.mrb[0].mxu1 %vm624_vm1, %v600_v5 }
  0x7b   : > { %1759 = vmatpush3.bf16.msra.mxu1 %v1948_v4  ;;  %1762 = vmatprep.mubr.msk.bf16.mxu1 %vm2162_vm0, %v2161_v0 }
  0x7c   : > { %1760 = vmatprep.subr.bf16.mxu1 %v2161_v0 }
  0x7f   : > { %1761 = vmatpush3.bf16.msra.mxu1 %v1949_v6 }
  0x80   : > { %1766 = vmatprep.subr.bf16.mxu1 %v2161_v0 }
  0x82   : > { %1763 = vmatmul.mubr.msk.bf16.vlgmr.msra.gmra.mrb[4].mxu1 %vm624_vm1, %v668_v8 }
  0x83   : > { %1768 = vmatprep.mubr.msk.bf16.mxu1 %vm2162_vm0, %v2161_v0 }
 0x14d   : > { %v662_v10 = vpop.f32.mrb[0].mxu1 }
 0x14e   : > { %v663_v11 = vadd.f32 %v1672_v9, %v662_v10  ;;  %v1756_v12 = vpop.f32.mrb[1].mxu1 }
 0x14f   : > { %v665_v13 = vpop.f32.mrb[2].mxu1 }
 0x150   : > { %v735_v14 = vpack.c.bf16 %v663_v11, %v663_v11  ;;  %v1757_v15 = vpop.f32.mrb[3].mxu1 }
 0x152   : > { %738 = vrot.lane.b32.xlu1 %v735_v14, %s2163_s21 }
 0x155   : > { %v729_v17 = vpop.f32.mrb[4].mxu1 }
 0x156   : > { %v730_v18 = vadd.f32 %v1676_v16, %v729_v17  ;;  %v1764_v19 = vpop.f32.mrb[5].mxu1 }
 0x157   : > { %v732_v20 = vpop.f32.mrb[6].mxu1 }
 0x158   : > { %v736_v21 = vpack.c.bf16 %v730_v18, %v730_v18  ;;  %v1765_v22 = vpop.f32.mrb[7].mxu1 }
 0x15a   : > { %749 = vrot.lane.b32.xlu1 %v736_v21, %s2164_s23  ;;  %745 = vrot.lane.b32.xlu0 %v736_v21, %s2163_s21  ;;  %v756_v23 = vsel %vm751_vm2, %v736_v21, 0 }
 0x15b   : > { %1767 = vmatpush3.bf16.xpose.msra.mxu1 %v756_v23 }
 0x15c   : > { %1772 = vmatprep.subr.bf16.mxu1 %v2161_v0 }
 0x15e   : > { %742 = vrot.lane.b32.xlu1 %v735_v14, %s2164_s23  ;;  %747 = vrot.lane.b32.xlu0 %v736_v21, %s2165_s30  ;;  %s2594_s23 = scalar_lea.hbm %s2695_s16, %s1710_s8 }
 0x162   : > { %740 = vrot.lane.b32.xlu0 %v735_v14, %s2165_s30  ;;  %1769 = vmatmul.mubr.msk.bf16.vlgmr.msra.gmra.mrb[8].mxu1 %vm751_vm2, %v735_v14 }
 0x163   : > { %1774 = vmatprep.mubr.msk.bf16.mxu1 %vm2162_vm0, %v2161_v0 }
 0x1c4   : > { %v739_v26 = vpop.permute.xlu1 %738 }
 0x1cc   : > { %v2457_v24 = vpop.permute.xlu0 %745  ;;  %v2466_v29 = vpop.permute.xlu1 %749 }
 0x1cd   : > { %v802_v25 = vsel %vm751_vm2, %v2457_v24, 0  ;;  %v894_v30 = vsel %vm751_vm2, %v2466_v29, 0 }
 0x1ce   : > { %1773 = vmatpush3.bf16.xpose.msra.mxu1 %v802_v25 }
 0x1cf   : > { %1784 = vmatprep.subr.bf16.mxu1 %v2161_v0 }
 0x1d0   : > { %v2462_v27 = vpop.permute.xlu0 %747  ;;  %v743_v32 = vpop.permute.xlu1 %742 }
 0x1d1   : > { %v848_v28 = vsel %vm751_vm2, %v2462_v27, 0 }
 0x1d2   : > { %1779 = vmatpush3.bf16.xpose.msra.mxu0 %v848_v28 }
 0x1d3   : > { %1790 = vmatprep.subr.bf16.mxu0 %v2161_v0 }
 0x1d4   : > { %v741_v31 = vpop.permute.xlu0 %740 }
 0x1d5   : > { %1775 = vmatmul.mubr.msk.bf16.vlgmr.msra.gmra.mrb[12].mxu1 %vm751_vm2, %v739_v26 }
 0x1d6   : > { %1785 = vmatpush3.bf16.xpose.msra.mxu1 %v894_v30  ;;  %1786 = vmatprep.mubr.msk.bf16.mxu1 %vm2162_vm0, %v2161_v0 }
 0x1d7   : > { %1796 = vmatprep.subr.bf16.mxu1 %v2161_v0 }
 0x1d9   : > { %1781 = vmatmul.mubr.msk.bf16.vlgmr.msra.gmra.mrb[0].mxu0 %vm751_vm2, %v741_v31 }
 0x1da   : > { %1792 = vmatprep.mubr.msk.bf16.mxu0 %vm2162_vm0, %v2161_v0 }
 0x1dd   : > { %1787 = vmatmul.mubr.msk.bf16.vlgmr.msra.gmra.mrb[16].mxu1 %vm751_vm2, %v743_v32 }
 0x1de   : > { %1798 = vmatprep.mubr.msk.bf16.mxu1 %vm2162_vm0, %v2161_v0 }
 0x235   : > { %v792_v33 = vpop.f32.mrb[8].mxu1 }
 0x236   : > { %v1770_v34 = vpop.f32.mrb[9].mxu1  ;;  %v936_v35 = vsel %vm751_vm2, %v792_v33, -inf }
 0x237   : > { %937 = vmax.xlane.f32.xlu0 %v936_v35  ;;  %v795_v36 = vpop.f32.mrb[10].mxu1 }
 0x238   : > { %v1771_v37 = vpop.f32.mrb[11].mxu1 }
 0x2a8   : > { %v838_v38 = vpop.f32.mrb[12].mxu1 }
 0x2a9   : > { %v1776_v39 = vpop.f32.mrb[13].mxu1  ;;  %v939_v40 = vsel %vm751_vm2, %v838_v38, -inf }
 0x2aa   : > { %940 = vmax.xlane.f32.xlu1 %v939_v40  ;;  %v841_v41 = vpop.f32.mrb[14].mxu1  ;;  %v1950_v39 = vld [vmem:[%s2648_s6] sm:$0xff]   ;;  %v1951_v40 = vld [vmem:[%s2648_s6 + $0x8] sm:$0xff]  }
 0x2ab   : > { %v1777_v42 = vpop.f32.mrb[15].mxu1 }
 0x2ac   : > { %v884_v43 = vpop.f32.mrb[0].mxu0 }
 0x2ad   : > { %v1782_v44 = vpop.f32.mrb[1].mxu0  ;;  %v942_v45 = vsel %vm751_vm2, %v884_v43, -inf }
 0x2ae   : > { %v887_v46 = vpop.f32.mrb[2].mxu0  ;;  %943 = vmax.xlane.f32.xlu0 %v942_v45 }
 0x2af   : > { %v1783_v47 = vpop.f32.mrb[3].mxu0 }
 0x2b0   : > { %v930_v48 = vpop.f32.mrb[16].mxu1 }
 0x2b1   : > { %v1788_v49 = vpop.f32.mrb[17].mxu1  ;;  %v945_v50 = vsel %vm751_vm2, %v930_v48, -inf }
 0x2b2   : > { %946 = vmax.xlane.f32.xlu0 %v945_v50  ;;  %v933_v51 = vpop.f32.mrb[18].mxu1 }
 0x2b3   : > { %v1789_v52 = vpop.f32.mrb[19].mxu1 }
 0x2bb   : > { %984 = vrot.lane.b32.xlu1 %v736_v21, %s2166_s19 }
 0x2c4   : > { %v938_v53 = vpop.xlane.xlu0 %937 }
 0x2c5   : > { %v948_v54 = vsub.f32 %v792_v33, %v938_v53 }
 0x2c7   : > { %v952_v55 = vmul.f32 1.442695, %v948_v54 }
 0x2c9   : > { %1962 = vpow2.f32 %v952_v55 }
 0x2d3   : > { %v1963_v56 = vpop.eup %1962 }
 0x2d4   : > { %v960_v57 = vsel %vm751_vm2, %v1963_v56, 0.0 }
 0x2df   : > { %961 = vadd.xlane.f32.xlu1 %v960_v57 }
 0x337   : > { %v941_v58 = vpop.xlane.xlu1 %940 }
 0x338   : > { %v949_v59 = vsub.f32 %v838_v38, %v941_v58 }
 0x33a   : > { %v954_v60 = vmul.f32 1.442695, %v949_v59 }
 0x33b   : > { %v944_v61 = vpop.xlane.xlu0 %943  ;;  %v985_v62 = vpop.permute.xlu1 %984 }
 0x33c   : > { %1964 = vpow2.f32 %v954_v60  ;;  %v950_v63 = vsub.f32 %v884_v43, %v944_v61  ;;  %v991_v1 = vsel %vm989_vm3, %v985_v62, 0  ;;  %v1688_v60 = vld [vmem:[#allocation2] ss:$0 sm:$0xff] }
 0x33d   : > { %1791 = vmatpush3.bf16.msra.mxu0 %v991_v1 }
 0x33e   : > { %v956_v2 = vmul.f32 1.442695, %v950_v63  ;;  %1802 = vmatprep.subr.bf16.mxu0 %v2161_v0 }
 0x33f   : > { %v947_v4 = vpop.xlane.xlu0 %946 }
 0x340   : > { %1966 = vpow2.f32 %v956_v2  ;;  %v951_v5 = vsub.f32 %v930_v48, %v947_v4 }
 0x342   : > { %v958_v6 = vmul.f32 1.442695, %v951_v5 }
 0x344   : > { %1968 = vpow2.f32 %v958_v6 }
 0x346   : > { %v1965_v7 = vpop.eup %1964 }
 0x347   : > { %v963_v8 = vsel %vm751_vm2, %v1965_v7, 0.0 }
 0x348   : > { %964 = vadd.xlane.f32.xlu0 %v963_v8 }
 0x34a   : > { %v1967_v9 = vpop.eup %1966 }
 0x34b   : > { %v966_v10 = vsel %vm751_vm2, %v1967_v9, 0.0 }
 0x34c   : > { %967 = vadd.xlane.f32.xlu1 %v966_v10 }
 0x34e   : > { %v1969_v11 = vpop.eup %1968 }
 0x34f   : > { %v969_v12 = vsel %vm751_vm2, %v1969_v11, 0.0 }
 0x350   : > { %970 = vadd.xlane.f32.xlu0 %v969_v12 }
 0x35d   : > { %1081 = vrot.lane.b32.xlu1 %v2462_v27, %s2166_s19 }
 0x361   : > { %1129 = vrot.lane.b32.xlu1 %v2466_v29, %s2166_s19 }
 0x366   : > { %1033 = vrot.lane.b32.xlu0 %v2457_v24, %s2166_s19  ;;  %s583_s19 = sand.u32 1, %s2140_s22  }
 0x367   : > { %s1669_s26 = sshll.u32 %s583_s19, 3  ;;  %s1530_s30 = scalar_lea.sflag [#allocation4], %s583_s19 }
 0x368   : > { %s585_s29 = scalar_lea.vmem [#allocation8], %s1669_s26  ;;  %s2074_s26 = sshll.u32 %s2171_s24, 4  ;;  %s2075_s26 = int_to_ptr.vmem [resolvable:$false] %s2074_s26 }
 0x369   : > { %s1544_s20 = sshll.u32 %s585_s29, 4  ;;  %s2076_s14 = scalar_lea.vmem %s2075_s26, 256  ;;  %s2596_s20 = int_to_ptr.vmem [resolvable:$true] %s1544_s20 }
 0x36a   : > { %s2070_s17 = scalar_lea.vmem %s2596_s20, 128  ;;  %p2077_p11 = scmp.lt.s32.totalorder %s2596_s20, %s2075_s26 }
 0x36b   : > { %p2071_p13 = scmp.ne.s32.totalorder %s2596_s20, %s2070_s17  ;;  %p2078_p3 = scmp.lt.s32.totalorder %s2076_s14, %s2070_s17 }
 0x36c   : > { %v962_v13 = vpop.xlane.xlu1 %961 }
 0x36d   : > { %1970 = vrcp.f32 %v962_v13  ;;  %p2072_p8 = pnand %p2071_p13, %p2696_p4  ;;  %p2079_p5 = por %p2078_p3, %p2077_p11 }
 0x36f   : > { %p2073_p10 = pneg %p2072_p8 }
 0x371   : > { %p2080_p6 = pnand %p2079_p5, %p2073_p10 }
 0x377   : > { %v1971_v14 = vpop.eup %1970 }
 0x378   : > { %v976_v15 = vmul.f32 %v1971_v14, %v1963_v56 }
 0x37a   : > { %v980_v16 = vpack.c.bf16 %v976_v15, %v976_v15 }
 0x37c   : > { %1793 = vmatmul.mubr.msk.bf16.vlgmr.msra.gmra.mrb[4].mxu0 %vm751_vm2, %v980_v16  ;;  %v1692_v16 = vld [vmem:[#allocation5] ss:$0 sm:$0xff] }
 0x37d   : > { %1804 = vmatprep.mubr.msk.bf16.mxu0 %vm2162_vm0, %v2161_v0 }
 0x3d5   : > { %v965_v17 = vpop.xlane.xlu0 %964 }
 0x3d6   : > { %1972 = vrcp.f32 %v965_v17 }
 0x3d9   : > { %v968_v18 = vpop.xlane.xlu1 %967 }
 0x3da   : > { %1974 = vrcp.f32 %v968_v18  ;;  %v1693_v18 = vld [vmem:[#allocation7] ss:$0 sm:$0xff] }
 0x3dd   : > { %v1082_v19 = vpop.permute.xlu1 %1081  ;;  %v971_v20 = vpop.xlane.xlu0 %970 }
 0x3de   : > { %v1087_v21 = vsel %vm989_vm3, %v1082_v19, 0  ;;  %1976 = vrcp.f32 %v971_v20 }
 0x3df   : > { %1803 = vmatpush3.bf16.msra.mxu0 %v1087_v21 }
 0x3e0   : > { %v1973_v22 = vpop.eup %1972  ;;  %1814 = vmatprep.subr.bf16.mxu0 %v2161_v0 }
 0x3e1   : > { %v977_v23 = vmul.f32 %v1973_v22, %v1965_v7  ;;  %v1034_v24 = vpop.permute.xlu0 %1033  ;;  %v1130_v26 = vpop.permute.xlu1 %1129  ;;  %v1954_v22 = vld [vmem:[%s2654_s12] sm:$0xff]  }
 0x3e2   : > { %v1039_v25 = vsel %vm989_vm3, %v1034_v24, 0  ;;  %v1135_v30 = vsel %vm989_vm3, %v1130_v26, 0  ;;  %v1956_v24 = vld [vmem:[%s2654_s12 + $0x10] sm:$0xff]   ;;  %v1958_v26 = vld [vmem:[%s2654_s12 + $0x20] sm:$0xff]  }
 0x3e3   : > { %1797 = vmatpush3.bf16.msra.mxu1 %v1039_v25  ;;  %v981_v27 = vpack.c.bf16 %v977_v23, %v977_v23  ;;  %v1955_v23 = vld [vmem:[%s2654_s12 + $0x8] sm:$0xff]   ;;  %v1957_v25 = vld [vmem:[%s2654_s12 + $0x18] sm:$0xff]  }
 0x3e4   : > { %v1975_v28 = vpop.eup %1974  ;;  %1808 = vmatprep.subr.bf16.mxu1 %v2161_v0 }
 0x3e5   : > { %v978_v29 = vmul.f32 %v1975_v28, %v1967_v9  ;;  %v1960_v28 = vld [vmem:[%s2654_s12 + $0x30] sm:$0xff]  }
 0x3e6   : > { %1799 = vmatmul.mubr.msk.bf16.vlgmr.msra.gmra.mrb[20].mxu1 %vm751_vm2, %v981_v27  ;;  %v1959_v27 = vld [vmem:[%s2654_s12 + $0x28] sm:$0xff]  }
 0x3e7   : > { %1809 = vmatpush3.bf16.msra.mxu1 %v1135_v30  ;;  %v982_v31 = vpack.c.bf16 %v978_v29, %v978_v29  ;;  %1810 = vmatprep.mubr.msk.bf16.mxu1 %vm2162_vm0, %v2161_v0  ;;  %v1961_v29 = vld [vmem:[%s2654_s12 + $0x38] sm:$0xff]   ;;  %v1694_v30 = vld [vmem:[%s2653_s11] ss:$0 sm:$0xff] }
 0x3e8   : > { %v1977_v32 = vpop.eup %1976  ;;  %1822 = vmatprep.subr.bf16.mxu1 %v2161_v0 }
 0x3e9   : > { %v979_v33 = vmul.f32 %v1977_v32, %v1969_v11  ;;  %1805 = vmatmul.mubr.msk.bf16.vlgmr.msra.gmra.mrb[8].mxu0 %vm751_vm2, %v982_v31  ;;  %v1952_v11 = vld [vmem:[%s2652_s10] sm:$0xff]  }
 0x3ea   : > { %1818 = vmatprep.mubr.msk.bf16.mxu0 %vm2162_vm0, %v2161_v0  ;;  %1815 = vmatpush3.bf16.msra.mxu0 %v1950_v39 }
 0x3eb   : > { %v983_v34 = vpack.c.bf16 %v979_v33, %v979_v33  ;;  %1816 = vmatprep.subr.bf16.mxu0 %v2161_v0 }
 0x3ee   : > { %1811 = vmatmul.mubr.msk.bf16.vlgmr.msra.gmra.mrb[24].mxu1 %vm751_vm2, %v983_v34  ;;  %1817 = vmatpush3.bf16.msra.mxu0 %v1951_v40 }
 0x3ef   : > { %1826 = vmatprep.mubr.msk.bf16.mxu1 %vm2162_vm0, %v2161_v0  ;;  %1830 = vmatprep.subr.bf16.mxu0 %v2161_v0 }
 0x3f0   : > { %1823 = vmatpush3.bf16.msra.mxu1 %v1952_v11 }
 0x3f1   : > { %1824 = vmatprep.subr.bf16.mxu1 %v2161_v0 }
 0x44f   : > { %v1027_v35 = vpop.f32.mrb[4].mxu0 }
 0x450   : > { %v1794_v36 = vpop.f32.mrb[5].mxu0 }
 0x451   : > { %v1030_v37 = vpop.f32.mrb[6].mxu0 }
 0x452   : > { %v1795_v38 = vpop.f32.mrb[7].mxu0 }
 0x4b9   : > { %v1075_v41 = vpop.f32.mrb[20].mxu1 }
 0x4ba   : > { %1178 = vrot.lane.b32.xlu0 %v1075_v41, %s2167_s15  ;;  %v1800_v42 = vpop.f32.mrb[21].mxu1 }
 0x4bb   : > { %v1078_v43 = vpop.f32.mrb[22].mxu1 }
 0x4bc   : > { %v1801_v44 = vpop.f32.mrb[23].mxu1  ;;  %v1123_v45 = vpop.f32.mrb[8].mxu0 }
 0x4bd   : > { %1182 = vrot.lane.b32.xlu1 %v1123_v45, %s2168_s18  ;;  %v1806_v46 = vpop.f32.mrb[9].mxu0 }
 0x4be   : > { %v1126_v47 = vpop.f32.mrb[10].mxu0 }
 0x4bf   : > { %v1807_v48 = vpop.f32.mrb[11].mxu0 }
 0x4c1   : > { %v1171_v49 = vpop.f32.mrb[24].mxu1 }
 0x4c2   : > { %1186 = vrot.lane.b32.xlu0 %v1171_v49, %s2169_s27  ;;  %v1812_v50 = vpop.f32.mrb[25].mxu1  ;;  %s2694_s27 = sld [smem:[#allocation22_spill]] }
 0x4c3   : > { %v1174_v51 = vpop.f32.mrb[26].mxu1 }
 0x4c4   : > { %v1813_v52 = vpop.f32.mrb[27].mxu1 }
 0x52c   : > { %v1179_v53 = vpop.permute.xlu0 %1178 }
 0x52d   : > { %v1189_v55 = vsel %vm751_vm2, %v1027_v35, %v1179_v53 }
 0x52f   : > { %v1183_v54 = vpop.permute.xlu1 %1182 }
 0x530   : > { %v1191_v56 = vsel %vm1190_vm4, %v1189_v55, %v1183_v54  ;;  %v2170_v55 = vmov -1.0  }
 0x534   : > { %v1187_v57 = vpop.permute.xlu0 %1186 }
 0x535   : > { %v1193_v58 = vsel %vm1192_vm5, %v1191_v56, %v1187_v57 }
 0x536   : > { %v1194_v59 = vpack.c.bf16 %v1193_v58, %v1193_v58 }
 0x538   : > { %1819 = vmatmul.mubr.msk.bf16.vlgmr.msra.gmra.mrb[12].mxu0 %vm624_vm1, %v1194_v59 }
 0x539   : > { %1846 = vmatprep.mubr.msk.bf16.mxu0 %vm2162_vm0, %v2161_v0  ;;  %1831 = vmatpush3.bf16.msra.mxu0 %v1954_v22 }
 0x53a   : > { %1832 = vmatprep.subr.bf16.mxu0 %v2161_v0 }
 0x53d   : > { %1833 = vmatpush3.bf16.msra.mxu0 %v1955_v23 }
 0x53e   : > { %1834 = vmatprep.subr.bf16.mxu0 %v2161_v0 }
 0x541   : > { %1835 = vmatpush3.bf16.msra.mxu0 %v1956_v24 }
 0x542   : > { %1836 = vmatprep.subr.bf16.mxu0 %v2161_v0 }
 0x545   : > { %1837 = vmatpush3.bf16.msra.mxu0 %v1957_v25 }
 0x546   : > { %1838 = vmatprep.subr.bf16.mxu0 %v2161_v0 }
 0x549   : > { %1839 = vmatpush3.bf16.msra.mxu0 %v1958_v26 }
 0x54a   : > { %1840 = vmatprep.subr.bf16.mxu0 %v2161_v0 }
 0x54d   : > { %1841 = vmatpush3.bf16.msra.mxu0 %v1959_v27 }
 0x54e   : > { %1842 = vmatprep.subr.bf16.mxu0 %v2161_v0 }
 0x551   : > { %1843 = vmatpush3.bf16.msra.mxu0 %v1960_v28 }
 0x552   : > { %1844 = vmatprep.subr.bf16.mxu0 %v2161_v0 }
 0x555   : > { %1845 = vmatpush3.bf16.msra.mxu0 %v1961_v29 }
 0x60b   : > { %v1255_v61 = vpop.f32.mrb[12].mxu0 }
 0x60c   : > { %v1256_v62 = vadd.f32 %v1688_v60, %v1255_v61  ;;  %v1820_v63 = vpop.f32.mrb[13].mxu0 }
 0x60d   : > { %v1258_v1 = vpop.f32.mrb[14].mxu0 }
 0x60e   : > { %v1821_v2 = vpop.f32.mrb[15].mxu0  ;;  %v1261_v4 = vadd.f32 %v1256_v62, %v2423_v3  ;;  %v1953_v3 = vld [vmem:[%s2652_s10 + $0x8] sm:$0xff]   ;;  %v1698_v62 = vld [vmem:[%s2655_s13] ss:$0 sm:$0xff] }
 0x60f   : > { %1825 = vmatpush3.bf16.msra.mxu1 %v1953_v3 }
 0x610   : > { %v1264_v5 = vsel %vm624_vm1, %v1261_v4, 0.0 }
 0x611   : > { %1265 = vadd.xlane.f32.xlu1 %v1264_v5 }
 0x69e   : > { %v1266_v6 = vpop.xlane.xlu1 %1265 }
 0x69f   : > { %v1268_v7 = vmul.f32 0.03125, %v1266_v6 }
 0x6a1   : > { %v1269_v8 = vsub.f32 %v1261_v4, %v1268_v7 }
 0x6a3   : > { %v1270_v9 = vmul.f32 %v1269_v8, %v1269_v8 }
 0x6a5   : > { %v1271_v10 = vsel %vm624_vm1, %v1270_v9, 0.0 }
 0x6a6   : > { %1272 = vadd.xlane.f32.xlu0 %v1271_v10 }
 0x733   : > { %v1273_v12 = vpop.xlane.xlu0 %1272 }
 0x734   : > { %v1274_v13 = vmul.f32 0.03125, %v1273_v12 }
 0x736   : > { %v1275_v14 = vadd.f32 1e-05, %v1274_v13 }
 0x738   : > { %1978 = vrsqrt.f32 %v1275_v14 }
 0x742   : > { %v1979_v15 = vpop.eup %1978 }
 0x743   : > { %v1277_v17 = vmul.f32 %v1979_v15, %v1269_v8 }
 0x745   : > { %v1284_v19 = vmul.f32 %v1692_v16, %v1277_v17  ;;  %v1707_v16 = vld [vmem:[%s2693_s25] ss:$0 sm:$0xff] }
 0x747   : > { %v2538_v20 = vadd.f32 %v1693_v18, %v1284_v19  ;;  %v1708_v18 = vld [vmem:[%s2694_s27] ss:$0 sm:$0xff] }
 0x749   : > { %v1292_v21 = vpack.c.bf16 %v2538_v20, %v2538_v20 }
 0x74b   : > { %1827 = vmatmul.mubr.msk.bf16.vlgmr.msra.gmra.mrb[28].mxu1 %vm624_vm1, %v1292_v21 }
 0x81e   : > { %v1353_v31 = vpop.f32.mrb[28].mxu1 }
 0x81f   : > { %v1354_v32 = vadd.f32 %v1694_v30, %v1353_v31  ;;  %v1828_v33 = vpop.f32.mrb[29].mxu1 }
 0x820   : > { %v1356_v34 = vpop.f32.mrb[30].mxu1 }
 0x821   : > { %v1360_v35 = vmul.f32 0.70710677, %v1354_v32  ;;  %v1829_v36 = vpop.f32.mrb[31].mxu1  ;;  %v1359_v58 = vmul.f32 0.5, %v1354_v32 }
 0x823   : > { %v1363_v37 = vand.u32 2147483647, %v1360_v35  ;;  %vm1361_vm6 = vcmp.ge.f32.partialorder %v1360_v35, 0.0 }
 0x824   : > { %v1362_v56 = vsel %vm1361_vm6, 1.0, %v2170_v55 }
 0x825   : > { %v1364_v38 = vmul.f32 0.3275911, %v1363_v37  ;;  %v1377_v0 = vsub.f32 0.0, %v1363_v37 }
 0x827   : > { %v1365_v39 = vadd.f32 1.0, %v1364_v38  ;;  %v1378_v41 = vmul.f32 %v1377_v0, %v1363_v37 }
 0x829   : > { %1980 = vrcp.f32 %v1365_v39  ;;  %v1379_v44 = vmul.f32 1.442695, %v1378_v41 }
 0x82b   : > { %1982 = vpow2.f32 %v1379_v44 }
 0x833   : > { %v1981_v40 = vpop.eup %1980 }
 0x834   : > { %v1368_v42 = vmul.f32 1.0614054, %v1981_v40 }
 0x835   : > { %v1983_v52 = vpop.eup %1982 }
 0x836   : > { %v1369_v43 = vadd.f32 -1.4531521, %v1368_v42 }
 0x838   : > { %v1370_v45 = vmul.f32 %v1981_v40, %v1369_v43 }
 0x83a   : > { %v1371_v46 = vadd.f32 1.4214138, %v1370_v45 }
 0x83c   : > { %v1372_v47 = vmul.f32 %v1981_v40, %v1371_v46 }
 0x83e   : > { %v1373_v48 = vadd.f32 -0.28449672, %v1372_v47 }
 0x840   : > { %v1374_v49 = vmul.f32 %v1981_v40, %v1373_v48 }
 0x842   : > { %v1375_v50 = vadd.f32 0.2548296, %v1374_v49 }
 0x844   : > { %v1376_v51 = vmul.f32 %v1981_v40, %v1375_v50 }
 0x846   : > { %v1381_v53 = vmul.f32 %v1983_v52, %v1376_v51 }
 0x848   : > { %v1382_v54 = vsub.f32 1.0, %v1381_v53 }
 0x84a   : > { %v1383_v57 = vmul.f32 %v1382_v54, %v1362_v56 }
 0x84c   : > { %v1384_v59 = vadd.f32 1.0, %v1383_v57 }
 0x84e   : > { %v1385_v60 = vmul.f32 %v1384_v59, %v1359_v58 }
 0x850   : > { %v1386_v61 = vpack.c.bf16 %v1385_v60, %v1385_v60 }
 0x852   : > { %1847 = vmatmul.mubr.bf16.vlgmr.msra.gmra.mrb[16].mxu0 %v1386_v61 }
 0x925   : > { %v1492_v63 = vpop.f32.mrb[16].mxu0 }
 0x926   : > { %v1493_v1 = vadd.f32 %v1698_v62, %v1492_v63  ;;  %v1848_v2 = vpop.f32.mrb[17].mxu0 }
 0x927   : > { %v1495_v4 = vpop.f32.mrb[18].mxu0 }
 0x928   : > { %v1849_v5 = vpop.f32.mrb[19].mxu0  ;;  %v1498_v6 = vadd.f32 %v1493_v1, %v2538_v20 }
 0x92a   : > { %v1501_v7 = vsel %vm624_vm1, %v1498_v6, 0.0 }
 0x92b   : > { %1502 = vadd.xlane.f32.xlu0 %v1501_v7 }
 0x9b8   : > { %v1503_v8 = vpop.xlane.xlu0 %1502 }
 0x9b9   : > { %v1504_v9 = vmul.f32 0.03125, %v1503_v8 }
 0x9bb   : > { %v1505_v10 = vsub.f32 %v1498_v6, %v1504_v9 }
 0x9bd   : > { %v1506_v11 = vmul.f32 %v1505_v10, %v1505_v10 }
 0x9bf   : > { %v1507_v3 = vsel %vm624_vm1, %v1506_v11, 0.0 }
 0x9c0   : > { %1508 = vadd.xlane.f32.xlu1 %v1507_v3 }
 0xa4d   : > { %v1509_v12 = vpop.xlane.xlu1 %1508 }
 0xa4e   : > { %v1510_v13 = vmul.f32 0.03125, %v1509_v12 }
 0xa50   : > { %v1511_v14 = vadd.f32 1e-05, %v1510_v13 }
 0xa52   : > { %1984 = vrsqrt.f32 %v1511_v14 }
 0xa5c   : > { %v1985_v15 = vpop.eup %1984 }
 0xa5d   : > { %v1513_v17 = vmul.f32 %v1985_v15, %v1505_v10 }
 0xa5f   : > { %v1520_v19 = vmul.f32 %v1707_v16, %v1513_v17 }
 0xa61   : > { %v1527_v20 = vadd.f32 %v1708_v18, %v1520_v19 }
 0xa63   : > { %1528 = vst.msk [vmem:[%s585_s29] sm:$0xff] %vm624_vm1, %v1527_v20 }
 0xa64   : > { %2083 = shalt.err (!%p2080_p6)
}
 0xa65   : > { %s2084_s19 = scalar_lea.hbm %s2594_s23, 128  ;;  %s2088_s18 = scalar_lea.hbm %s2695_s16, 256 }
 0xa66   : > { %p2085_p7 = scmp.ne.s32.totalorder %s2594_s23, %s2084_s19  ;;  %p2089_p0 = scmp.lt.u32.totalorder %s2594_s23, %s2695_s16 }
 0xa67   : > { %p2090_p2 = scmp.lt.u32.totalorder %s2088_s18, %s2084_s19  ;;  %p2092_p13 = scmp.lt.u32.totalorder %s2084_s19, %s2594_s23 }
 0xa68   : > { %p2086_p9 = pnand %p2085_p7, %p2696_p4 }
 0xa69   : > { %p2091_p1 = por %p2090_p2, %p2089_p0 }
 0xa6a   : > { %p2087_p12 = pneg %p2086_p9 }
 0xa6b   : > { %p2093_p8 = por %p2092_p13, %p2091_p1 }
 0xa6d   : > { %p2094_p10 = pnand %p2093_p8, %p2087_p12 }
 0xa6f   : > { %2097 = shalt.err (!%p2094_p10)
}
 0xa70   : > { %1862 = dma.vmem_to_hbm [thread:$0]  (%p2696_p4), %s2596_s20, 128, %s2594_s23, %s1530_s30  }
 0xa71 PF: > { %s2697_s29 = sld [smem:[#allocation15_spill]]  ;;  %s2698_s21 = sld [smem:[#allocation12_spill]] }
 0xa72   : > { %s2699_s28 = sld [smem:[#allocation17_spill]] }
 0xa77   : > { %p1884_p11 = scmp.ge.s32.totalorder %s2697_s29, 2  ;;  %s1556_s17 = sand.u32 1, %s2698_s21  }
 0xa78   : > { %p2700_p3 = scmp.ne.s32.totalorder %s2699_s28, 0  ;;  %s1557_s24 = scalar_lea.sflag [#allocation4], %s1556_s17 }
 0xa7a   : > { %p1875_p5 = pnand %p1884_p11, %p2700_p3 }
 0xa7c   : > { %2131 = dma.done.wait (!%p1875_p5), %s1557_s24, 128  }
 0xa7d   : > { %2133 = vsyncadd (!%p1875_p5), %s1557_s24, 4294967168  ;;  %s31_s26 = sadd.s32 1, %s2697_s29   ;;  %s2701_s14 = sld [smem:[#allocation13_spill]] }
 0xa7e   : > { %p28_p6 = scmp.ge.s32.totalorder %s31_s26, 4   ;;  %s2702_s23 = sld [smem:[#allocation18_spill]] }
 0xa7f   : > { %s2703_s24 = sld [smem:[#allocation14_spill]]  ;;  %s2704_s25 = sld [smem:[#allocation16_spill]] }
 0xa80   : > { %s2705_s21 = smov %s2140_s22  ;;  %30 = sbr.rel (!%p28_p6) target bundleno = 12 (0xc), region = 135 }
 0xa83   : > { %s2706_s22 = smov %s2701_s14 }
 0xa87   :  { %1562 = vsyncpa [#allocation3], 1 }
 0xa88   :  { %1564 = vsyncpa [#allocation3 + $0x1], 1 }
 0xa89   :  { %1565 = vsyncpa [#allocation6], 1 }
 0xa8a   :  { %1566 = vsyncpa [#allocation4], 1 }
 0xa8b   :  { %1568 = vsyncpa [#allocation4 + $0x1], 1 }

// kernel: tpu_custom_call.1
= control target key start
LH: loop header
LB: loop body
LE: loop exit
PB: predicated region body
PF: predicated region fallthrough
CT: control target
= control target key end

     0   :  { %s2642_s0 = inlined_call_operand.vmem [shape: f32[2,8,32], index: 0, kind: input, shape index: {}]   ;;  %s2643_s1 = inlined_call_operand.vmem [shape: f32[2,8,32], index: 1, kind: input, shape index: {}]   ;;  %s2644_s2 = inlined_call_operand.vmem [shape: bf16[32,32], index: 2, kind: input, shape index: {}]   ;;  %s2645_s3 = inlined_call_operand.vmem [shape: f32[1,32], index: 3, kind: input, shape index: {}]   ;;  %s2646_s4 = inlined_call_operand.vmem [shape: bf16[32,64], index: 4, kind: input, shape index: {}]   ;;  %s2647_s5 = inlined_call_operand.vmem [shape: f32[1,64], index: 5, kind: input, shape index: {}]   ;;  %s2648_s6 = inlined_call_operand.vmem [shape: bf16[32,32], index: 6, kind: input, shape index: {}]   ;;  %s2649_s7 = inlined_call_operand.hbm [shape: f32[1,32], index: 7, kind: input, shape index: {}]   ;;  %s2650_s8 = inlined_call_operand.hbm [shape: f32[1,32], index: 8, kind: input, shape index: {}]   ;;  %s2651_s9 = inlined_call_operand.hbm [shape: f32[1,32], index: 9, kind: input, shape index: {}]   ;;  %s2652_s10 = inlined_call_operand.vmem [shape: bf16[32,128], index: 10, kind: input, shape index: {}]   ;;  %s2653_s11 = inlined_call_operand.vmem [shape: f32[1,128], index: 11, kind: input, shape index: {}]   ;;  %s2654_s12 = inlined_call_operand.vmem [shape: bf16[128,32], index: 12, kind: input, shape index: {}]   ;;  %s2655_s13 = inlined_call_operand.vmem [shape: f32[1,32], index: 13, kind: input, shape index: {}]   ;;  %s2656_s14 = inlined_call_operand.vmem [shape: f32[1,32], index: 14, kind: input, shape index: {}]   ;;  %s2657_s15 = inlined_call_operand.vmem [shape: f32[1,32], index: 15, kind: input, shape index: {}]   ;;  %s2658_s16 = inlined_call_operand.hbm [shape: f32[2,8,32], index: 16, kind: output, shape index: {}]  }
   0x1   :  { %2671 = sst [smem:[#allocation19_spill]] %s2642_s0 }
   0x2   :  { %2672 = sst [smem:[#allocation20_spill]] %s2650_s8 }
   0x3   :  { %2673 = sst [smem:[#allocation21_spill]] %s2656_s14 }
   0x4   :  { %2674 = sst [smem:[#allocation22_spill]] %s2657_s15 }
   0x5   :  { %2675 = sst [smem:[#allocation23_spill]] %s2658_s16 }
   0x6   :  { %21 = vsyncpa [#allocation3], 0 }
   0x7   :  { %22 = vsyncpa [#allocation6], 0 }
   0x8   :  { %23 = vsyncpa [#allocation4], 0 }
   0x9   :  { %25 = vsyncpa [#allocation4 + $0x1], 0  ;;  %s2257_s21 = smov 0   ;;  %s2259_s22 = smov 0  }
   0xa   :  { %s2261_s23 = smov 0   ;;  %s2263_s24 = smov 0  }
   0xb   :  { %s2265_s25 = smov 0   ;;  %s2267_s26 = smov 0  }
   0xc LB: > { %2676 = sst [smem:[#allocation12_spill]] %s2136_s21  ;;  %s1658_s27 = sadd.s32 4294967295, %s2156_s26   ;;  %s2156_s26 = sphi %s2267_s26, %s31_s26   ;;  %s2152_s25 = sphi %s2265_s25, %s2704_s25   ;;  %s2148_s24 = sphi %s2263_s24, %s2703_s24   ;;  %s2144_s23 = sphi %s2261_s23, %s2702_s23   ;;  %s2140_s22 = sphi %s2259_s22, %s2706_s22   ;;  %s2136_s21 = sphi %s2257_s21, %s2705_s21  }
   0xd   : > { %2677 = sst [smem:[#allocation13_spill]] %s2144_s23  ;;  %s1659_s28 = sadd.s32 4294967294, %s2156_s26  }
   0xe   : > { %2678 = sst [smem:[#allocation14_spill]] %s2152_s25  ;;  %s43_s29 = sadd.s32 1, %s2152_s25 }
   0xf   : > { %2679 = sst [smem:[#allocation15_spill]] %s2156_s26  ;;  %s400_s30 = sadd.s32 1, %s2144_s23 }
  0x10   : > { %p45_p0 = scmp.ge.s32.totalorder %s43_s29, 2  ;;  %p410_p1 = scmp.ne.s32.totalorder %s2144_s23, %s2140_s22 }
  0x11   : > { %p411_p2 = scmp.eq.s32.totalorder %s1658_s27, 1  ;;  %p416_p3 = scmp.ne.s32.totalorder %s2140_s22, %s2136_s21 }
  0x12   : > { %s2708_s29 = smov (%p45_p0, %s43_s29), 0  ;;  %p417_p5 = scmp.eq.s32.totalorder %s1659_s28, 1 }
  0x13   : > { %2680 = sst [smem:[#allocation16_spill]] %s2708_s29  ;;  %p2297_p4 = por %p411_p2, %p410_p1 }
  0x14   : > { %s395_s17 = ssub.s32 %s2152_s25, %s2708_s29  ;;  %p1660_p6 = scmp.ge.s32.totalorder %s2156_s26, 1 }
  0x15   : > { %s2681_s0 = scalar_select %p2297_p4, 1, 0 }
  0x16   : > { %p398_p7 = scmp.eq.s32.totalorder %s395_s17, 0  ;;  %p2304_p8 = por %p417_p5, %p416_p3 }
  0x17   : > { %p424_p9 = scmp.lt.s32.totalorder %s2156_s26, 3  ;;  %p2316_p11 = scmp.eq.s32.totalorder %s1658_s27, 0 }
  0x18   : > { %s2682_s18 = scalar_select %p2304_p8, 1, 0 }
  0x19   : > { %s2310_s19 = scalar_select %p398_p7, %s2144_s23, %s400_s30  }
  0x1a   : > { %2683 = sst [smem:[#allocation17_spill]] %s2682_s18  ;;  %p2312_p10 = pnand %p1660_p6, %p424_p9 }
  0x1b   : > { %2684 = sst [smem:[#allocation18_spill]] %s2310_s19  ;;  %s2158_s28 = smov [#allocation5]  }
  0x1c   : > { %s2685_s20 = scalar_select %p2312_p10, 1, 0 }
  0x1d   : > { %s2686_s21 = scalar_select %p2316_p11, 1, 0 }
  0x1e   : > { %p1864_p12 = pneg %p2312_p10  ;;  %s463_s17 = sshll.u32 %s2158_s28, 4  ;;  %s464_s17 = int_to_ptr.vmem [resolvable:$true] %s463_s17 }
  0x1f   : > { %s2159_s30 = smov [#allocation2]   ;;  %s2688_s8 = sld [smem:[#allocation20_spill]] }
  0x20   : > { %p2324_p13 = pnand %p2316_p11, %p1864_p12  ;;  %s452_s25 = sshll.u32 %s2159_s30, 4  ;;  %s2328_s25 = int_to_ptr.vmem [resolvable:$true] %s452_s25 }
  0x22   : > { %p2338_p1 = pneg %p2324_p13 }
  0x25   : > { %s1986_s23 = scalar_lea.hbm %s2688_s8, 16 }
  0x26   : > { %p1987_p0 = scmp.ne.s32.totalorder %s2688_s8, %s1986_s23  ;;  %p1993_p5 = scmp.lt.u32.totalorder %s1986_s23, %s2688_s8 }
  0x28   : > { %p1989_p2 = pnand %p2338_p1, %p1987_p0 }
  0x2a   : > { %p1990_p3 = pneg %p1989_p2 }
  0x2c   : > { %p1995_p6 = pnand %p1993_p5, %p1990_p3 }
  0x2e   : > { %1998 = shalt.err (!%p1995_p6)
}
  0x2f   : > { %s1999_s19 = scalar_lea.vmem %s464_s17, 16  ;;  %s2006_s26 = scalar_lea.vmem %s464_s17, 32 }
  0x30   : > { %p2000_p7 = scmp.ne.s32.totalorder %s464_s17, %s1999_s19  ;;  %p2007_p8 = scmp.lt.s32.totalorder %s464_s17, %s464_s17 }
  0x31   : > { %p2008_p4 = scmp.lt.s32.totalorder %s2006_s26, %s1999_s19 }
  0x32   : > { %p2002_p9 = pnand %p2000_p7, %p2338_p1 }
  0x33   : > { %p2009_p11 = por %p2008_p4, %p2007_p8 }
  0x34   : > { %p2003_p12 = pneg %p2002_p9 }
  0x36   : > { %p2010_p10 = pnand %p2009_p11, %p2003_p12 }
  0x38   : > { %2013 = shalt.err (!%p2010_p10)
}
  0x39   : > { %1870 = dma.hbm_to_vmem [thread:$0]  (!%p2324_p13), %s2688_s8, 16, %s464_s17, [#allocation6]  }
  0x3a   : > { %s2014_s30 = scalar_lea.hbm %s2649_s7, 16 }
  0x3b   : > { %p2015_p0 = scmp.ne.s32.totalorder %s2649_s7, %s2014_s30  ;;  %p2021_p8 = scmp.lt.u32.totalorder %s2014_s30, %s2649_s7 }
  0x3d   : > { %p2017_p2 = pnand %p2015_p0, %p2338_p1 }
  0x3f   : > { %p2018_p4 = pneg %p2017_p2 }
  0x41   : > { %p2023_p10 = pnand %p2021_p8, %p2018_p4 }
  0x43   : > { %2026 = shalt.err (!%p2023_p10)
}
  0x44   : > { %s2027_s17 = scalar_lea.vmem %s2328_s25, 16  ;;  %s2034_s14 = scalar_lea.vmem %s2328_s25, 32 }
  0x45   : > { %p2028_p11 = scmp.ne.s32.totalorder %s2328_s25, %s2027_s17  ;;  %p2035_p6 = scmp.lt.s32.totalorder %s2328_s25, %s2328_s25 }
  0x46   : > { %p2036_p7 = scmp.lt.s32.totalorder %s2034_s14, %s2027_s17 }
  0x47   : > { %p2030_p3 = pnand %p2028_p11, %p2338_p1 }
  0x48   : > { %p2037_p9 = por %p2036_p7, %p2035_p6 }
  0x49   : > { %p2031_p5 = pneg %p2030_p3 }
  0x4b   : > { %p2038_p12 = pnand %p2037_p9, %p2031_p5 }
  0x4d   : > { %2041 = shalt.err (!%p2038_p12)
}
  0x4e   : > { %1867 = dma.hbm_to_vmem [thread:$0]  (!%p2324_p13), %s2649_s7, 16, %s2328_s25, [#allocation3]  }
  0x4f   : > { %s2160_s27 = smov [#allocation7]   ;;  %s2042_s19 = scalar_lea.hbm %s2651_s9, 16 }
  0x50   : > { %s474_s16 = sshll.u32 %s2160_s27, 4  ;;  %p2043_p0 = scmp.ne.s32.totalorder %s2651_s9, %s2042_s19  ;;  %s475_s16 = int_to_ptr.vmem [resolvable:$true] %s474_s16 }
  0x51   : > { %p2049_p8 = scmp.lt.u32.totalorder %s2042_s19, %s2651_s9 }
  0x52   : > { %p2045_p2 = pnand %p2043_p0, %p2338_p1 }
  0x54   : > { %p2046_p4 = pneg %p2045_p2 }
  0x56   : > { %p2051_p10 = pnand %p2049_p8, %p2046_p4 }
  0x58   : > { %2054 = shalt.err (!%p2051_p10)
}
  0x59   : > { %s2055_s25 = scalar_lea.vmem %s475_s16, 16  ;;  %s2062_s15 = scalar_lea.vmem %s475_s16, 32 }
  0x5a   : > { %p2056_p11 = scmp.ne.s32.totalorder %s475_s16, %s2055_s25  ;;  %p2063_p6 = scmp.lt.s32.totalorder %s475_s16, %s475_s16 }
  0x5b   : > { %p2064_p7 = scmp.lt.s32.totalorder %s2062_s15, %s2055_s25 }
  0x5c   : > { %p2058_p3 = pnand %p2056_p11, %p2338_p1 }
  0x5d   : > { %p2065_p9 = por %p2064_p7, %p2063_p6 }
  0x5e   : > { %p2059_p5 = pneg %p2058_p3 }
  0x60   : > { %p2066_p12 = pnand %p2065_p9, %p2059_p5 }
  0x62   : > { %2069 = shalt.err (!%p2066_p12)
}
  0x63   : > { %1873 = dma.hbm_to_vmem [thread:$0]  (!%p2324_p13), %s2651_s9, 16, %s475_s16, [#allocation6]  }
  0x64   : > { %p2690_p0 = scmp.ne.s32.totalorder %s2685_s20, 0 }
  0x65   : > { %p2691_p2 = scmp.ne.s32.totalorder (!%p2690_p0), %s2686_s21, 0 }
  0x66   : > { %522 = sbr.rel (%p2690_p0) target bundleno = 2673 (0xa71), region = 84 }
  0x6d   : > { %2123 = dma.done.wait (%p2691_p2), [#allocation3], 16  }
  0x6e   : > { %2125 = vsyncadd (%p2691_p2), [#allocation3], 4294967280 }
  0x6f   : > { %2127 = dma.done.wait (%p2691_p2), [#allocation6], 32  }
  0x70   : > { %2129 = vsyncadd (%p2691_p2), [#allocation6], 4294967264  ;;  %p586_p1 = scmp.lt.s32.totalorder %s2148_s24, 1  ;;  %v2161_v0 = vmov 0.0   ;;  %vm2162_vm0 = vmmov 0   ;;  %s2692_s28 = sld [smem:[#allocation19_spill]] }
  0x71   : > { %1750 = vmatprep.subr.bf16.mxu1 %v2161_v0  ;;  %1754 = vmatprep.mubr.msk.bf16.mxu1 %vm2162_vm0, %v2161_v0  ;;  %v1946_v1 = vld [vmem:[%s2644_s2] sm:$0xff]   ;;  %v1947_v2 = vld [vmem:[%s2644_s2 + $0x8] sm:$0xff]   ;;  %vm624_vm1 = vcmask 261120   ;;  %s2163_s21 = smov 120   ;;  %vm751_vm2 = vcmask 64512   ;;  %s2164_s23 = smov 104  }
  0x72   : > { %s587_s8 = scalar_select %p586_p1, %s2148_s24, 1  ;;  %1778 = vmatprep.subr.bf16.mxu0 %v2161_v0  ;;  %1780 = vmatprep.mubr.msk.bf16.mxu0 %vm2162_vm0, %v2161_v0  ;;  %v1948_v4 = vld [vmem:[%s2646_s4] sm:$0xff]   ;;  %v1949_v6 = vld [vmem:[%s2646_s4 + $0x8] sm:$0xff]   ;;  %vm989_vm3 = vcmask 1043456   ;;  %vm1190_vm4 = vcmask 130048   ;;  %vm1192_vm5 = vcmask 195584  }
  0x73   : > { %1751 = vmatpush3.bf16.msra.mxu1 %v1946_v1  ;;  %v1672_v9 = vld [vmem:[%s2645_s3] ss:$0 sm:$0xff]  ;;  %s2165_s30 = smov 112   ;;  %s2166_s19 = smov 96  }
  0x74   : > { %s1670_s29 = sshll.u32 %s587_s8, 3  ;;  %1752 = vmatprep.subr.bf16.mxu1 %v2161_v0  ;;  %v1676_v16 = vld [vmem:[%s2647_s5] ss:$0 sm:$0xff]  ;;  %s2167_s15 = smov 8  }
  0x75   : > { %s596_s18 = scalar_lea.vmem %s2643_s1, %s1670_s29  ;;  %s2169_s27 = smov 24  }
  0x76   : > { %s592_s16 = scalar_lea.vmem %s2692_s28, %s1670_s29  ;;  %v599_v7 = vld [vmem:[%s596_s18] sm:$0xff]  ;;  %s2168_s18 = smov 16  }
  0x77   : > { %v2423_v3 = vld [vmem:[%s592_s16] sm:$0xff]  ;;  %1753 = vmatpush3.bf16.msra.mxu1 %v1947_v2  ;;  %v668_v8 = vpack.c.bf16 %v599_v7, %v599_v7  ;;  %s2693_s25 = sld [smem:[#allocation21_spill]]  ;;  %s1710_s8 = sshll.u32 %s2148_s24, 7 }
  0x78   : > { %v600_v5 = vpack.c.bf16 %v2423_v3, %v2423_v3  ;;  %1758 = vmatprep.subr.bf16.mxu1 %v2161_v0  ;;  %s2695_s16 = sld [smem:[#allocation23_spill]]  ;;  %p2696_p4 = scmp.ne.s32.totalorder %s2681_s0, 0 }
  0x79   : > { %s2171_s24 = smov [#allocation8]  }
  0x7a   : > { %1755 = vmatmul.mubr.msk.bf16.vlgmr.msra.gmra.mrb[0].mxu1 %vm624_vm1, %v600_v5 }
  0x7b   : > { %1759 = vmatpush3.bf16.msra.mxu1 %v1948_v4  ;;  %1762 = vmatprep.mubr.msk.bf16.mxu1 %vm2162_vm0, %v2161_v0 }
  0x7c   : > { %1760 = vmatprep.subr.bf16.mxu1 %v2161_v0 }
  0x7f   : > { %1761 = vmatpush3.bf16.msra.mxu1 %v1949_v6 }
  0x80   : > { %1766 = vmatprep.subr.bf16.mxu1 %v2161_v0 }
  0x82   : > { %1763 = vmatmul.mubr.msk.bf16.vlgmr.msra.gmra.mrb[4].mxu1 %vm624_vm1, %v668_v8 }
  0x83   : > { %1768 = vmatprep.mubr.msk.bf16.mxu1 %vm2162_vm0, %v2161_v0 }
 0x14d   : > { %v662_v10 = vpop.f32.mrb[0].mxu1 }
 0x14e   : > { %v663_v11 = vadd.f32 %v1672_v9, %v662_v10  ;;  %v1756_v12 = vpop.f32.mrb[1].mxu1 }
 0x14f   : > { %v665_v13 = vpop.f32.mrb[2].mxu1 }
 0x150   : > { %v735_v14 = vpack.c.bf16 %v663_v11, %v663_v11  ;;  %v1757_v15 = vpop.f32.mrb[3].mxu1 }
 0x152   : > { %738 = vrot.lane.b32.xlu1 %v735_v14, %s2163_s21 }
 0x155   : > { %v729_v17 = vpop.f32.mrb[4].mxu1 }
 0x156   : > { %v730_v18 = vadd.f32 %v1676_v16, %v729_v17  ;;  %v1764_v19 = vpop.f32.mrb[5].mxu1 }
 0x157   : > { %v732_v20 = vpop.f32.mrb[6].mxu1 }
 0x158   : > { %v736_v21 = vpack.c.bf16 %v730_v18, %v730_v18  ;;  %v1765_v22 = vpop.f32.mrb[7].mxu1 }
 0x15a   : > { %749 = vrot.lane.b32.xlu1 %v736_v21, %s2164_s23  ;;  %745 = vrot.lane.b32.xlu0 %v736_v21, %s2163_s21  ;;  %v756_v23 = vsel %vm751_vm2, %v736_v21, 0 }
 0x15b   : > { %1767 = vmatpush3.bf16.xpose.msra.mxu1 %v756_v23 }
 0x15c   : > { %1772 = vmatprep.subr.bf16.mxu1 %v2161_v0 }
 0x15e   : > { %742 = vrot.lane.b32.xlu1 %v735_v14, %s2164_s23  ;;  %747 = vrot.lane.b32.xlu0 %v736_v21, %s2165_s30  ;;  %s2594_s23 = scalar_lea.hbm %s2695_s16, %s1710_s8 }
 0x162   : > { %740 = vrot.lane.b32.xlu0 %v735_v14, %s2165_s30  ;;  %1769 = vmatmul.mubr.msk.bf16.vlgmr.msra.gmra.mrb[8].mxu1 %vm751_vm2, %v735_v14 }
 0x163   : > { %1774 = vmatprep.mubr.msk.bf16.mxu1 %vm2162_vm0, %v2161_v0 }
 0x1c4   : > { %v739_v26 = vpop.permute.xlu1 %738 }
 0x1cc   : > { %v2457_v24 = vpop.permute.xlu0 %745  ;;  %v2466_v29 = vpop.permute.xlu1 %749 }
 0x1cd   : > { %v802_v25 = vsel %vm751_vm2, %v2457_v24, 0  ;;  %v894_v30 = vsel %vm751_vm2, %v2466_v29, 0 }
 0x1ce   : > { %1773 = vmatpush3.bf16.xpose.msra.mxu1 %v802_v25 }
 0x1cf   : > { %1784 = vmatprep.subr.bf16.mxu1 %v2161_v0 }
 0x1d0   : > { %v2462_v27 = vpop.permute.xlu0 %747  ;;  %v743_v32 = vpop.permute.xlu1 %742 }
 0x1d1   : > { %v848_v28 = vsel %vm751_vm2, %v2462_v27, 0 }
 0x1d2   : > { %1779 = vmatpush3.bf16.xpose.msra.mxu0 %v848_v28 }
 0x1d3   : > { %1790 = vmatprep.subr.bf16.mxu0 %v2161_v0 }
 0x1d4   : > { %v741_v31 = vpop.permute.xlu0 %740 }
 0x1d5   : > { %1775 = vmatmul.mubr.msk.bf16.vlgmr.msra.gmra.mrb[12].mxu1 %vm751_vm2, %v739_v26 }
 0x1d6   : > { %1785 = vmatpush3.bf16.xpose.msra.mxu1 %v894_v30  ;;  %1786 = vmatprep.mubr.msk.bf16.mxu1 %vm2162_vm0, %v2161_v0 }
 0x1d7   : > { %1796 = vmatprep.subr.bf16.mxu1 %v2161_v0 }
 0x1d9   : > { %1781 = vmatmul.mubr.msk.bf16.vlgmr.msra.gmra.mrb[0].mxu0 %vm751_vm2, %v741_v31 }
 0x1da   : > { %1792 = vmatprep.mubr.msk.bf16.mxu0 %vm2162_vm0, %v2161_v0 }
 0x1dd   : > { %1787 = vmatmul.mubr.msk.bf16.vlgmr.msra.gmra.mrb[16].mxu1 %vm751_vm2, %v743_v32 }
 0x1de   : > { %1798 = vmatprep.mubr.msk.bf16.mxu1 %vm2162_vm0, %v2161_v0 }
 0x235   : > { %v792_v33 = vpop.f32.mrb[8].mxu1 }
 0x236   : > { %v1770_v34 = vpop.f32.mrb[9].mxu1  ;;  %v936_v35 = vsel %vm751_vm2, %v792_v33, -inf }
 0x237   : > { %937 = vmax.xlane.f32.xlu0 %v936_v35  ;;  %v795_v36 = vpop.f32.mrb[10].mxu1 }
 0x238   : > { %v1771_v37 = vpop.f32.mrb[11].mxu1 }
 0x2a8   : > { %v838_v38 = vpop.f32.mrb[12].mxu1 }
 0x2a9   : > { %v1776_v39 = vpop.f32.mrb[13].mxu1  ;;  %v939_v40 = vsel %vm751_vm2, %v838_v38, -inf }
 0x2aa   : > { %940 = vmax.xlane.f32.xlu1 %v939_v40  ;;  %v841_v41 = vpop.f32.mrb[14].mxu1  ;;  %v1950_v39 = vld [vmem:[%s2648_s6] sm:$0xff]   ;;  %v1951_v40 = vld [vmem:[%s2648_s6 + $0x8] sm:$0xff]  }
 0x2ab   : > { %v1777_v42 = vpop.f32.mrb[15].mxu1 }
 0x2ac   : > { %v884_v43 = vpop.f32.mrb[0].mxu0 }
 0x2ad   : > { %v1782_v44 = vpop.f32.mrb[1].mxu0  ;;  %v942_v45 = vsel %vm751_vm2, %v884_v43, -inf }
 0x2ae   : > { %v887_v46 = vpop.f32.mrb[2].mxu0  ;;  %943 = vmax.xlane.f32.xlu0 %v942_v45 }
 0x2af   : > { %v1783_v47 = vpop.f32.mrb[3].mxu0 }
 0x2b0   : > { %v930_v48 = vpop.f32.mrb[16].mxu1 }
 0x2b1   : > { %v1788_v49 = vpop.f32.mrb[17].mxu1  ;;  %v945_v50 = vsel %vm751_vm2, %v930_v48, -inf }
 0x2b2   : > { %946 = vmax.xlane.f32.xlu0 %v945_v50  ;;  %v933_v51 = vpop.f32.mrb[18].mxu1 }
 0x2b3   : > { %v1789_v52 = vpop.f32.mrb[19].mxu1 }
 0x2bb   : > { %984 = vrot.lane.b32.xlu1 %v736_v21, %s2166_s19 }
 0x2c4   : > { %v938_v53 = vpop.xlane.xlu0 %937 }
 0x2c5   : > { %v948_v54 = vsub.f32 %v792_v33, %v938_v53 }
 0x2c7   : > { %v952_v55 = vmul.f32 1.442695, %v948_v54 }
 0x2c9   : > { %1962 = vpow2.f32 %v952_v55 }
 0x2d3   : > { %v1963_v56 = vpop.eup %1962 }
 0x2d4   : > { %v960_v57 = vsel %vm751_vm2, %v1963_v56, 0.0 }
 0x2df   : > { %961 = vadd.xlane.f32.xlu1 %v960_v57 }
 0x337   : > { %v941_v58 = vpop.xlane.xlu1 %940 }
 0x338   : > { %v949_v59 = vsub.f32 %v838_v38, %v941_v58 }
 0x33a   : > { %v954_v60 = vmul.f32 1.442695, %v949_v59 }
 0x33b   : > { %v944_v61 = vpop.xlane.xlu0 %943  ;;  %v985_v62 = vpop.permute.xlu1 %984 }
 0x33c   : > { %1964 = vpow2.f32 %v954_v60  ;;  %v950_v63 = vsub.f32 %v884_v43, %v944_v61  ;;  %v991_v1 = vsel %vm989_vm3, %v985_v62, 0  ;;  %v1688_v60 = vld [vmem:[#allocation2] ss:$0 sm:$0xff] }
 0x33d   : > { %1791 = vmatpush3.bf16.msra.mxu0 %v991_v1 }
 0x33e   : > { %v956_v2 = vmul.f32 1.442695, %v950_v63  ;;  %1802 = vmatprep.subr.bf16.mxu0 %v2161_v0 }
 0x33f   : > { %v947_v4 = vpop.xlane.xlu0 %946 }
 0x340   : > { %1966 = vpow2.f32 %v956_v2  ;;  %v951_v5 = vsub.f32 %v930_v48, %v947_v4 }
 0x342   : > { %v958_v6 = vmul.f32 1.442695, %v951_v5 }
 0x344   : > { %1968 = vpow2.f32 %v958_v6 }
 0x346   : > { %v1965_v7 = vpop.eup %1964 }
 0x347   : > { %v963_v8 = vsel %vm751_vm2, %v1965_v7, 0.0 }
 0x348   : > { %964 = vadd.xlane.f32.xlu0 %v963_v8 }
 0x34a   : > { %v1967_v9 = vpop.eup %1966 }
 0x34b   : > { %v966_v10 = vsel %vm751_vm2, %v1967_v9, 0.0 }
 0x34c   : > { %967 = vadd.xlane.f32.xlu1 %v966_v10 }
 0x34e   : > { %v1969_v11 = vpop.eup %1968 }
 0x34f   : > { %v969_v12 = vsel %vm751_vm2, %v1969_v11, 0.0 }
 0x350   : > { %970 = vadd.xlane.f32.xlu0 %v969_v12 }
 0x35d   : > { %1081 = vrot.lane.b32.xlu1 %v2462_v27, %s2166_s19 }
 0x361   : > { %1129 = vrot.lane.b32.xlu1 %v2466_v29, %s2166_s19 }
 0x366   : > { %1033 = vrot.lane.b32.xlu0 %v2457_v24, %s2166_s19  ;;  %s583_s19 = sand.u32 1, %s2140_s22  }
 0x367   : > { %s1669_s26 = sshll.u32 %s583_s19, 3  ;;  %s1530_s30 = scalar_lea.sflag [#allocation4], %s583_s19 }
 0x368   : > { %s585_s29 = scalar_lea.vmem [#allocation8], %s1669_s26  ;;  %s2074_s26 = sshll.u32 %s2171_s24, 4  ;;  %s2075_s26 = int_to_ptr.vmem [resolvable:$false] %s2074_s26 }
 0x369   : > { %s1544_s20 = sshll.u32 %s585_s29, 4  ;;  %s2076_s14 = scalar_lea.vmem %s2075_s26, 256  ;;  %s2596_s20 = int_to_ptr.vmem [resolvable:$true] %s1544_s20 }
 0x36a   : > { %s2070_s17 = scalar_lea.vmem %s2596_s20, 128  ;;  %p2077_p11 = scmp.lt.s32.totalorder %s2596_s20, %s2075_s26 }
 0x36b   : > { %p2071_p13 = scmp.ne.s32.totalorder %s2596_s20, %s2070_s17  ;;  %p2078_p3 = scmp.lt.s32.totalorder %s2076_s14, %s2070_s17 }
 0x36c   : > { %v962_v13 = vpop.xlane.xlu1 %961 }
 0x36d   : > { %1970 = vrcp.f32 %v962_v13  ;;  %p2072_p8 = pnand %p2071_p13, %p2696_p4  ;;  %p2079_p5 = por %p2078_p3, %p2077_p11 }
 0x36f   : > { %p2073_p10 = pneg %p2072_p8 }
 0x371   : > { %p2080_p6 = pnand %p2079_p5, %p2073_p10 }
 0x377   : > { %v1971_v14 = vpop.eup %1970 }
 0x378   : > { %v976_v15 = vmul.f32 %v1971_v14, %v1963_v56 }
 0x37a   : > { %v980_v16 = vpack.c.bf16 %v976_v15, %v976_v15 }
 0x37c   : > { %1793 = vmatmul.mubr.msk.bf16.vlgmr.msra.gmra.mrb[4].mxu0 %vm751_vm2, %v980_v16  ;;  %v1692_v16 = vld [vmem:[#allocation5] ss:$0 sm:$0xff] }
 0x37d   : > { %1804 = vmatprep.mubr.msk.bf16.mxu0 %vm2162_vm0, %v2161_v0 }
 0x3d5   : > { %v965_v17 = vpop.xlane.xlu0 %964 }
 0x3d6   : > { %1972 = vrcp.f32 %v965_v17 }
 0x3d9   : > { %v968_v18 = vpop.xlane.xlu1 %967 }
 0x3da   : > { %1974 = vrcp.f32 %v968_v18  ;;  %v1693_v18 = vld [vmem:[#allocation7] ss:$0 sm:$0xff] }
 0x3dd   : > { %v1082_v19 = vpop.permute.xlu1 %1081  ;;  %v971_v20 = vpop.xlane.xlu0 %970 }
 0x3de   : > { %v1087_v21 = vsel %vm989_vm3, %v1082_v19, 0  ;;  %1976 = vrcp.f32 %v971_v20 }
 0x3df   : > { %1803 = vmatpush3.bf16.msra.mxu0 %v1087_v21 }
 0x3e0   : > { %v1973_v22 = vpop.eup %1972  ;;  %1814 = vmatprep.subr.bf16.mxu0 %v2161_v0 }
 0x3e1   : > { %v977_v23 = vmul.f32 %v1973_v22, %v1965_v7  ;;  %v1034_v24 = vpop.permute.xlu0 %1033  ;;  %v1130_v26 = vpop.permute.xlu1 %1129  ;;  %v1954_v22 = vld [vmem:[%s2654_s12] sm:$0xff]  }
 0x3e2   : > { %v1039_v25 = vsel %vm989_vm3, %v1034_v24, 0  ;;  %v1135_v30 = vsel %vm989_vm3, %v1130_v26, 0  ;;  %v1956_v24 = vld [vmem:[%s2654_s12 + $0x10] sm:$0xff]   ;;  %v1958_v26 = vld [vmem:[%s2654_s12 + $0x20] sm:$0xff]  }
 0x3e3   : > { %1797 = vmatpush3.bf16.msra.mxu1 %v1039_v25  ;;  %v981_v27 = vpack.c.bf16 %v977_v23, %v977_v23  ;;  %v1955_v23 = vld [vmem:[%s2654_s12 + $0x8] sm:$0xff]   ;;  %v1957_v25 = vld [vmem:[%s2654_s12 + $0x18] sm:$0xff]  }
 0x3e4   : > { %v1975_v28 = vpop.eup %1974  ;;  %1808 = vmatprep.subr.bf16.mxu1 %v2161_v0 }
 0x3e5   : > { %v978_v29 = vmul.f32 %v1975_v28, %v1967_v9  ;;  %v1960_v28 = vld [vmem:[%s2654_s12 + $0x30] sm:$0xff]  }
 0x3e6   : > { %1799 = vmatmul.mubr.msk.bf16.vlgmr.msra.gmra.mrb[20].mxu1 %vm751_vm2, %v981_v27  ;;  %v1959_v27 = vld [vmem:[%s2654_s12 + $0x28] sm:$0xff]  }
 0x3e7   : > { %1809 = vmatpush3.bf16.msra.mxu1 %v1135_v30  ;;  %v982_v31 = vpack.c.bf16 %v978_v29, %v978_v29  ;;  %1810 = vmatprep.mubr.msk.bf16.mxu1 %vm2162_vm0, %v2161_v0  ;;  %v1961_v29 = vld [vmem:[%s2654_s12 + $0x38] sm:$0xff]   ;;  %v1694_v30 = vld [vmem:[%s2653_s11] ss:$0 sm:$0xff] }
 0x3e8   : > { %v1977_v32 = vpop.eup %1976  ;;  %1822 = vmatprep.subr.bf16.mxu1 %v2161_v0 }
 0x3e9   : > { %v979_v33 = vmul.f32 %v1977_v32, %v1969_v11  ;;  %1805 = vmatmul.mubr.msk.bf16.vlgmr.msra.gmra.mrb[8].mxu0 %vm751_vm2, %v982_v31  ;;  %v1952_v11 = vld [vmem:[%s2652_s10] sm:$0xff]  }
 0x3ea   : > { %1818 = vmatprep.mubr.msk.bf16.mxu0 %vm2162_vm0, %v2161_v0  ;;  %1815 = vmatpush3.bf16.msra.mxu0 %v1950_v39 }
 0x3eb   : > { %v983_v34 = vpack.c.bf16 %v979_v33, %v979_v33  ;;  %1816 = vmatprep.subr.bf16.mxu0 %v2161_v0 }
 0x3ee   : > { %1811 = vmatmul.mubr.msk.bf16.vlgmr.msra.gmra.mrb[24].mxu1 %vm751_vm2, %v983_v34  ;;  %1817 = vmatpush3.bf16.msra.mxu0 %v1951_v40 }
 0x3ef   : > { %1826 = vmatprep.mubr.msk.bf16.mxu1 %vm2162_vm0, %v2161_v0  ;;  %1830 = vmatprep.subr.bf16.mxu0 %v2161_v0 }
 0x3f0   : > { %1823 = vmatpush3.bf16.msra.mxu1 %v1952_v11 }
 0x3f1   : > { %1824 = vmatprep.subr.bf16.mxu1 %v2161_v0 }
 0x44f   : > { %v1027_v35 = vpop.f32.mrb[4].mxu0 }
 0x450   : > { %v1794_v36 = vpop.f32.mrb[5].mxu0 }
 0x451   : > { %v1030_v37 = vpop.f32.mrb[6].mxu0 }
 0x452   : > { %v1795_v38 = vpop.f32.mrb[7].mxu0 }
 0x4b9   : > { %v1075_v41 = vpop.f32.mrb[20].mxu1 }
 0x4ba   : > { %1178 = vrot.lane.b32.xlu0 %v1075_v41, %s2167_s15  ;;  %v1800_v42 = vpop.f32.mrb[21].mxu1 }
 0x4bb   : > { %v1078_v43 = vpop.f32.mrb[22].mxu1 }
 0x4bc   : > { %v1801_v44 = vpop.f32.mrb[23].mxu1  ;;  %v1123_v45 = vpop.f32.mrb[8].mxu0 }
 0x4bd   : > { %1182 = vrot.lane.b32.xlu1 %v1123_v45, %s2168_s18  ;;  %v1806_v46 = vpop.f32.mrb[9].mxu0 }
 0x4be   : > { %v1126_v47 = vpop.f32.mrb[10].mxu0 }
 0x4bf   : > { %v1807_v48 = vpop.f32.mrb[11].mxu0 }
 0x4c1   : > { %v1171_v49 = vpop.f32.mrb[24].mxu1 }
 0x4c2   : > { %1186 = vrot.lane.b32.xlu0 %v1171_v49, %s2169_s27  ;;  %v1812_v50 = vpop.f32.mrb[25].mxu1  ;;  %s2694_s27 = sld [smem:[#allocation22_spill]] }
 0x4c3   : > { %v1174_v51 = vpop.f32.mrb[26].mxu1 }
 0x4c4   : > { %v1813_v52 = vpop.f32.mrb[27].mxu1 }
 0x52c   : > { %v1179_v53 = vpop.permute.xlu0 %1178 }
 0x52d   : > { %v1189_v55 = vsel %vm751_vm2, %v1027_v35, %v1179_v53 }
 0x52f   : > { %v1183_v54 = vpop.permute.xlu1 %1182 }
 0x530   : > { %v1191_v56 = vsel %vm1190_vm4, %v1189_v55, %v1183_v54  ;;  %v2170_v55 = vmov -1.0  }
 0x534   : > { %v1187_v57 = vpop.permute.xlu0 %1186 }
 0x535   : > { %v1193_v58 = vsel %vm1192_vm5, %v1191_v56, %v1187_v57 }
 0x536   : > { %v1194_v59 = vpack.c.bf16 %v1193_v58, %v1193_v58 }
 0x538   : > { %1819 = vmatmul.mubr.msk.bf16.vlgmr.msra.gmra.mrb[12].mxu0 %vm624_vm1, %v1194_v59 }
 0x539   : > { %1846 = vmatprep.mubr.msk.bf16.mxu0 %vm2162_vm0, %v2161_v0  ;;  %1831 = vmatpush3.bf16.msra.mxu0 %v1954_v22 }
 0x53a   : > { %1832 = vmatprep.subr.bf16.mxu0 %v2161_v0 }
 0x53d   : > { %1833 = vmatpush3.bf16.msra.mxu0 %v1955_v23 }
 0x53e   : > { %1834 = vmatprep.subr.bf16.mxu0 %v2161_v0 }
 0x541   : > { %1835 = vmatpush3.bf16.msra.mxu0 %v1956_v24 }
 0x542   : > { %1836 = vmatprep.subr.bf16.mxu0 %v2161_v0 }
 0x545   : > { %1837 = vmatpush3.bf16.msra.mxu0 %v1957_v25 }
 0x546   : > { %1838 = vmatprep.subr.bf16.mxu0 %v2161_v0 }
 0x549   : > { %1839 = vmatpush3.bf16.msra.mxu0 %v1958_v26 }
 0x54a   : > { %1840 = vmatprep.subr.bf16.mxu0 %v2161_v0 }
 0x54d   : > { %1841 = vmatpush3.bf16.msra.mxu0 %v1959_v27 }
 0x54e   : > { %1842 = vmatprep.subr.bf16.mxu0 %v2161_v0 }
 0x551   : > { %1843 = vmatpush3.bf16.msra.mxu0 %v1960_v28 }
 0x552   : > { %1844 = vmatprep.subr.bf16.mxu0 %v2161_v0 }
 0x555   : > { %1845 = vmatpush3.bf16.msra.mxu0 %v1961_v29 }
 0x60b   : > { %v1255_v61 = vpop.f32.mrb[12].mxu0 }
 0x60c   : > { %v1256_v62 = vadd.f32 %v1688_v60, %v1255_v61  ;;  %v1820_v63 = vpop.f32.mrb[13].mxu0 }
 0x60d   : > { %v1258_v1 = vpop.f32.mrb[14].mxu0 }
 0x60e   : > { %v1821_v2 = vpop.f32.mrb[15].mxu0  ;;  %v1261_v4 = vadd.f32 %v1256_v62, %v2423_v3  ;;  %v1953_v3 = vld [vmem:[%s2652_s10 + $0x8] sm:$0xff]   ;;  %v1698_v62 = vld [vmem:[%s2655_s13] ss:$0 sm:$0xff] }
 0x60f   : > { %1825 = vmatpush3.bf16.msra.mxu1 %v1953_v3 }
 0x610   : > { %v1264_v5 = vsel %vm624_vm1, %v1261_v4, 0.0 }
 0x611   : > { %1265 = vadd.xlane.f32.xlu1 %v1264_v5 }
 0x69e   : > { %v1266_v6 = vpop.xlane.xlu1 %1265 }
 0x69f   : > { %v1268_v7 = vmul.f32 0.03125, %v1266_v6 }
 0x6a1   : > { %v1269_v8 = vsub.f32 %v1261_v4, %v1268_v7 }
 0x6a3   : > { %v1270_v9 = vmul.f32 %v1269_v8, %v1269_v8 }
 0x6a5   : > { %v1271_v10 = vsel %vm624_vm1, %v1270_v9, 0.0 }
 0x6a6   : > { %1272 = vadd.xlane.f32.xlu0 %v1271_v10 }
 0x733   : > { %v1273_v12 = vpop.xlane.xlu0 %1272 }
 0x734   : > { %v1274_v13 = vmul.f32 0.03125, %v1273_v12 }
 0x736   : > { %v1275_v14 = vadd.f32 1e-05, %v1274_v13 }
 0x738   : > { %1978 = vrsqrt.f32 %v1275_v14 }
 0x742   : > { %v1979_v15 = vpop.eup %1978 }
 0x743   : > { %v1277_v17 = vmul.f32 %v1979_v15, %v1269_v8 }
 0x745   : > { %v1284_v19 = vmul.f32 %v1692_v16, %v1277_v17  ;;  %v1707_v16 = vld [vmem:[%s2693_s25] ss:$0 sm:$0xff] }
 0x747   : > { %v2538_v20 = vadd.f32 %v1693_v18, %v1284_v19  ;;  %v1708_v18 = vld [vmem:[%s2694_s27] ss:$0 sm:$0xff] }
 0x749   : > { %v1292_v21 = vpack.c.bf16 %v2538_v20, %v2538_v20 }
 0x74b   : > { %1827 = vmatmul.mubr.msk.bf16.vlgmr.msra.gmra.mrb[28].mxu1 %vm624_vm1, %v1292_v21 }
 0x81e   : > { %v1353_v31 = vpop.f32.mrb[28].mxu1 }
 0x81f   : > { %v1354_v32 = vadd.f32 %v1694_v30, %v1353_v31  ;;  %v1828_v33 = vpop.f32.mrb[29].mxu1 }
 0x820   : > { %v1356_v34 = vpop.f32.mrb[30].mxu1 }
 0x821   : > { %v1360_v35 = vmul.f32 0.70710677, %v1354_v32  ;;  %v1829_v36 = vpop.f32.mrb[31].mxu1  ;;  %v1359_v58 = vmul.f32 0.5, %v1354_v32 }
 0x823   : > { %v1363_v37 = vand.u32 2147483647, %v1360_v35  ;;  %vm1361_vm6 = vcmp.ge.f32.partialorder %v1360_v35, 0.0 }
 0x824   : > { %v1362_v56 = vsel %vm1361_vm6, 1.0, %v2170_v55 }
 0x825   : > { %v1364_v38 = vmul.f32 0.3275911, %v1363_v37  ;;  %v1377_v0 = vsub.f32 0.0, %v1363_v37 }
 0x827   : > { %v1365_v39 = vadd.f32 1.0, %v1364_v38  ;;  %v1378_v41 = vmul.f32 %v1377_v0, %v1363_v37 }
 0x829   : > { %1980 = vrcp.f32 %v1365_v39  ;;  %v1379_v44 = vmul.f32 1.442695, %v1378_v41 }
 0x82b   : > { %1982 = vpow2.f32 %v1379_v44 }
 0x833   : > { %v1981_v40 = vpop.eup %1980 }
 0x834   : > { %v1368_v42 = vmul.f32 1.0614054, %v1981_v40 }
 0x835   : > { %v1983_v52 = vpop.eup %1982 }
 0x836   : > { %v1369_v43 = vadd.f32 -1.4531521, %v1368_v42 }
 0x838   : > { %v1370_v45 = vmul.f32 %v1981_v40, %v1369_v43 }
 0x83a   : > { %v1371_v46 = vadd.f32 1.4214138, %v1370_v45 }
 0x83c   : > { %v1372_v47 = vmul.f32 %v1981_v40, %v1371_v46 }
 0x83e   : > { %v1373_v48 = vadd.f32 -0.28449672, %v1372_v47 }
 0x840   : > { %v1374_v49 = vmul.f32 %v1981_v40, %v1373_v48 }
 0x842   : > { %v1375_v50 = vadd.f32 0.2548296, %v1374_v49 }
 0x844   : > { %v1376_v51 = vmul.f32 %v1981_v40, %v1375_v50 }
 0x846   : > { %v1381_v53 = vmul.f32 %v1983_v52, %v1376_v51 }
 0x848   : > { %v1382_v54 = vsub.f32 1.0, %v1381_v53 }
 0x84a   : > { %v1383_v57 = vmul.f32 %v1382_v54, %v1362_v56 }
 0x84c   : > { %v1384_v59 = vadd.f32 1.0, %v1383_v57 }
 0x84e   : > { %v1385_v60 = vmul.f32 %v1384_v59, %v1359_v58 }
 0x850   : > { %v1386_v61 = vpack.c.bf16 %v1385_v60, %v1385_v60 }
 0x852   : > { %1847 = vmatmul.mubr.bf16.vlgmr.msra.gmra.mrb[16].mxu0 %v1386_v61 }
 0x925   : > { %v1492_v63 = vpop.f32.mrb[16].mxu0 }
 0x926   : > { %v1493_v1 = vadd.f32 %v1698_v62, %v1492_v63  ;;  %v1848_v2 = vpop.f32.mrb[17].mxu0 }
 0x927   : > { %v1495_v4 = vpop.f32.mrb[18].mxu0 }
 0x928   : > { %v1849_v5 = vpop.f32.mrb[19].mxu0  ;;  %v1498_v6 = vadd.f32 %v1493_v1, %v2538_v20 }
 0x92a   : > { %v1501_v7 = vsel %vm624_vm1, %v1498_v6, 0.0 }
 0x92b   : > { %1502 = vadd.xlane.f32.xlu0 %v1501_v7 }
 0x9b8   : > { %v1503_v8 = vpop.xlane.xlu0 %1502 }
 0x9b9   : > { %v1504_v9 = vmul.f32 0.03125, %v1503_v8 }
 0x9bb   : > { %v1505_v10 = vsub.f32 %v1498_v6, %v1504_v9 }
 0x9bd   : > { %v1506_v11 = vmul.f32 %v1505_v10, %v1505_v10 }
 0x9bf   : > { %v1507_v3 = vsel %vm624_vm1, %v1506_v11, 0.0 }
 0x9c0   : > { %1508 = vadd.xlane.f32.xlu1 %v1507_v3 }
 0xa4d   : > { %v1509_v12 = vpop.xlane.xlu1 %1508 }
 0xa4e   : > { %v1510_v13 = vmul.f32 0.03125, %v1509_v12 }
 0xa50   : > { %v1511_v14 = vadd.f32 1e-05, %v1510_v13 }
 0xa52   : > { %1984 = vrsqrt.f32 %v1511_v14 }
 0xa5c   : > { %v1985_v15 = vpop.eup %1984 }
 0xa5d   : > { %v1513_v17 = vmul.f32 %v1985_v15, %v1505_v10 }
 0xa5f   : > { %v1520_v19 = vmul.f32 %v1707_v16, %v1513_v17 }
 0xa61   : > { %v1527_v20 = vadd.f32 %v1708_v18, %v1520_v19 }
 0xa63   : > { %1528 = vst.msk [vmem:[%s585_s29] sm:$0xff] %vm624_vm1, %v1527_v20 }
 0xa64   : > { %2083 = shalt.err (!%p2080_p6)
}
 0xa65   : > { %s2084_s19 = scalar_lea.hbm %s2594_s23, 128  ;;  %s2088_s18 = scalar_lea.hbm %s2695_s16, 256 }
 0xa66   : > { %p2085_p7 = scmp.ne.s32.totalorder %s2594_s23, %s2084_s19  ;;  %p2089_p0 = scmp.lt.u32.totalorder %s2594_s23, %s2695_s16 }
 0xa67   : > { %p2090_p2 = scmp.lt.u32.totalorder %s2088_s18, %s2084_s19  ;;  %p2092_p13 = scmp.lt.u32.totalorder %s2084_s19, %s2594_s23 }
 0xa68   : > { %p2086_p9 = pnand %p2085_p7, %p2696_p4 }
 0xa69   : > { %p2091_p1 = por %p2090_p2, %p2089_p0 }
 0xa6a   : > { %p2087_p12 = pneg %p2086_p9 }
 0xa6b   : > { %p2093_p8 = por %p2092_p13, %p2091_p1 }
 0xa6d   : > { %p2094_p10 = pnand %p2093_p8, %p2087_p12 }
 0xa6f   : > { %2097 = shalt.err (!%p2094_p10)
}
 0xa70   : > { %1862 = dma.vmem_to_hbm [thread:$0]  (%p2696_p4), %s2596_s20, 128, %s2594_s23, %s1530_s30  }
 0xa71 PF: > { %s2697_s29 = sld [smem:[#allocation15_spill]]  ;;  %s2698_s21 = sld [smem:[#allocation12_spill]] }
 0xa72   : > { %s2699_s28 = sld [smem:[#allocation17_spill]] }
 0xa77   : > { %p1884_p11 = scmp.ge.s32.totalorder %s2697_s29, 2  ;;  %s1556_s17 = sand.u32 1, %s2698_s21  }
 0xa78   : > { %p2700_p3 = scmp.ne.s32.totalorder %s2699_s28, 0  ;;  %s1557_s24 = scalar_lea.sflag [#allocation4], %s1556_s17 }
 0xa7a   : > { %p1875_p5 = pnand %p1884_p11, %p2700_p3 }
 0xa7c   : > { %2131 = dma.done.wait (!%p1875_p5), %s1557_s24, 128  }
 0xa7d   : > { %2133 = vsyncadd (!%p1875_p5), %s1557_s24, 4294967168  ;;  %s31_s26 = sadd.s32 1, %s2697_s29   ;;  %s2701_s14 = sld [smem:[#allocation13_spill]] }
 0xa7e   : > { %p28_p6 = scmp.ge.s32.totalorder %s31_s26, 4   ;;  %s2702_s23 = sld [smem:[#allocation18_spill]] }
 0xa7f   : > { %s2703_s24 = sld [smem:[#allocation14_spill]]  ;;  %s2704_s25 = sld [smem:[#allocation16_spill]] }
 0xa80   : > { %s2705_s21 = smov %s2140_s22  ;;  %30 = sbr.rel (!%p28_p6) target bundleno = 12 (0xc), region = 135 }
 0xa83   : > { %s2706_s22 = smov %s2701_s14 }
 0xa87   :  { %1562 = vsyncpa [#allocation3], 1 }
 0xa88   :  { %1564 = vsyncpa [#allocation3 + $0x1], 1 }
 0xa89   :  { %1565 = vsyncpa [#allocation6], 1 }
 0xa8a   :  { %1566 = vsyncpa [#allocation4], 1 }
 0xa8b   :  { %1568 = vsyncpa [#allocation4 + $0x1], 1 }

</bundles_post_ra>
